<compile_context>
chip_gen: v6e
topology: v6e:2x2x1
jax: 0.10.0
libtpu: 0.0.40
codegen_flags: <defaults>
</compile_context>

<pallas_src>
import jax
import jax.numpy as jnp
from jax.experimental import pallas as pl
from jax.experimental.pallas import tpu as pltpu

L = 512   # feature dim (self.L)
D = 128   # attention hidden dim (self.D)
K = 1     # heads per branch (self.K); two branches -> 2 fused logit columns


def _gated_attention_kernel(x_ref, wvu_ref, bvu_ref, w12_ref, b12_ref,
                            m_ref, a_ref):
    BB, N, _ = x_ref.shape
    x = x_ref[...]                               # [BB, N, L] bf16 (cast in wrapper)
    x2d = x.reshape(BB * N, L)                   # merge leading dims (free)

    # Fused attention_V | attention_U: [BB*N, L] @ [L, 2D], bf16 in, f32 accum.
    h = jnp.dot(x2d, wvu_ref[...],
                preferred_element_type=jnp.float32) + bvu_ref[...]   # [BB*N, 2D]
    a_v = jnp.tanh(h[:, :D])                     # [BB*N, D] f32
    a_u = jax.nn.sigmoid(h[:, D:])               # [BB*N, D] f32
    gated = a_v * a_u                            # [BB*N, D] f32

    # Fused attention_weights1 | attention_weights2: [BB*N, D] @ [D, 2] + bias.
    logits = jnp.dot(gated, w12_ref[...],
                     preferred_element_type=jnp.float32) + b12_ref[...]  # [BB*N, 2]

    # Relayout to [BB, 2, N] (instances on the lane axis).  Kept on purpose —
    # see module docstring: this is the cheapest place for the unavoidable
    # head/instance transpose; it enables an MXU-native pooling matmul and
    # dense M/A stores below.
    logits = jnp.swapaxes(logits.reshape(BB, N, 2), 1, 2)   # [BB, 2, N]

    # Softmax over instances (last axis), per bag and per head (f32).
    lmax = jnp.max(logits, axis=-1, keepdims=True)
    e = jnp.exp(logits - lmax)
    denom = jnp.sum(e, axis=-1, keepdims=True)   # >= 1 (exp(0) term present)
    r = pl.reciprocal(denom, approx=True)        # EUP
    r = r * (2.0 - denom * r)                    # one Newton step -> ~f32 exact
    attn = e * r                                 # [BB, 2, N] f32

    # Flat, sublane/lane-dense A slab: rows are (bag, head) pairs.
    a_ref[...] = attn.reshape(2 * BB, N).astype(a_ref.dtype)

    # Pooling: one batched [2, N] @ [N, L] per bag, bf16 in, f32 accumulation.
    m = jnp.einsum('bkn,bnl->bkl', attn.astype(jnp.bfloat16), x,
                   preferred_element_type=jnp.float32)       # [BB, 2, L] f32
    m_ref[...] = m.reshape(2 * BB, L).astype(m_ref.dtype)    # dense M slab


def _pick_bags_per_step(B, N):
    """Bags per grid step: ~1024 matmul rows, VMEM-capped, >=2 (even) grid steps."""
    ROWS_TARGET = 1024                   # DMA efficiency plateaus ~512-1024 rows
    VMEM_BUDGET = 20 * 1024 * 1024       # stay well inside v7x's 32 MiB scoped VMEM

    def vmem_bytes(bb):
        x_blk = bb * N * L * 2                       # bf16 x block
        m_blk = 2 * bb * L * 4                       # f32 M slab block
        a_blk = 2 * bb * N * 4                       # f32 A slab block
        h = bb * N * (2 * D) * 4                     # fused V|U pre-activation
        gated = bb * N * D * 4
        misc = 2 * bb * pl.cdiv(N, 8) * 8 * 128 * 4  # lane-padded logits/attn temps
        wts = 2 * (L * 2 * D * 2 + 2 * D * 4 + D * 2 * 4 + 2 * 4)  # double-buffered
        return 2 * (x_blk + m_blk + a_blk) + h + gated + misc + wts

    bb = max(1, min(B, ROWS_TARGET // max(N, 1)))
    while bb > 1 and vmem_bytes(bb) > VMEM_BUDGET:
        bb -= 1
    g = pl.cdiv(B, bb)
    if B >= 2:
        g = max(g, 2)                    # v7x megacore: both TensorCores get work
    if g > 1 and g % 2:
        g += 1                           # even step count across the 2 cores
    return max(1, pl.cdiv(B, g))


def gated_attention(x, params, *, bags_per_step=None):
    """x: [B, N, L] float32. Returns (M1 [B,L], M2 [B,L], A1 [B,N], A2 [B,N])."""
    B, N, Lx = x.shape
    assert Lx == L

    if bags_per_step is None:
        BB = _pick_bags_per_step(B, N)
    else:
        BB = max(1, min(B, int(bags_per_step)))
    G = pl.cdiv(B, BB)
    if G > 1 and (2 * BB) % 8:
        BB = 4 * pl.cdiv(BB, 4)          # keep flat output blocks sublane-aligned
        G = pl.cdiv(B, BB)
    B_pad = G * BB

    # x dominates HBM traffic -> ship it in bf16 (f32 accumulation in-kernel).
    xp = x.astype(jnp.bfloat16)
    if B_pad != B:
        xp = jnp.pad(xp, ((0, B_pad - B), (0, 0), (0, 0)))

    # Fused / pre-cast weights (stored as [in, out]; concat along output dim).
    wvu = jnp.concatenate([params["wv"], params["wu"]], axis=1).astype(jnp.bfloat16)  # [L, 2D]
    bvu = jnp.concatenate([params["bv"], params["bu"]], axis=1)                        # [1, 2D]
    w12 = jnp.concatenate([params["w1"], params["w2"]], axis=1)                        # [D, 2]
    b12 = jnp.concatenate([params["b1"], params["b2"]], axis=1)                        # [1, 2]

    const = lambda shape: pl.BlockSpec(shape, lambda b: tuple(0 for _ in shape))

    out_shapes = (
        jax.ShapeDtypeStruct((B_pad * 2, L), jnp.float32),   # [M1;M2] per-bag pairs
        jax.ShapeDtypeStruct((B_pad * 2, N), jnp.float32),   # [A1;A2] per-bag pairs
    )

    m, a = pl.pallas_call(
        _gated_attention_kernel,
        out_shape=out_shapes,
        grid_spec=pltpu.PrefetchScalarGridSpec(
            num_scalar_prefetch=0,
            grid=(G,),
            in_specs=[
                pl.BlockSpec((BB, N, L), lambda b: (b, 0, 0)),   # x (BB bags, bf16)
                const((L, 2 * D)),   # Wv|Wu fused (bf16)
                const((1, 2 * D)),   # bv|bu fused (f32)
                const((D, 2)),       # w1|w2 fused (f32)
                const((1, 2)),       # b1|b2 fused (f32)
            ],
            out_specs=(
                pl.BlockSpec((2 * BB, L), lambda b: (b, 0)),
                pl.BlockSpec((2 * BB, N), lambda b: (b, 0)),
            ),
        ),
        compiler_params=pltpu.CompilerParams(
            dimension_semantics=("parallel",),
            vmem_limit_bytes=32 * 1024 * 1024,
        ),
    )(xp, wvu, bvu, w12, b12)

    # NOTE: PyTorch .squeeze() on [B, L, 1] with B > 1 yields [B, L]; matched here.
    m = m.reshape(B_pad, 2, L)
    a = a.reshape(B_pad, 2, N)
    return m[:B, 0, :], m[:B, 1, :], a[:B, 0, :], a[:B, 1, :]


def init_params(key):
    """Deterministic synthetic init matching nn.Linear shapes (stored as [in, out])."""
    ks = jax.random.split(key, 8)
    s = lambda fan_in: 1.0 / jnp.sqrt(fan_in)
    return {
        "wv": jax.random.uniform(ks[0], (L, D), jnp.float32, -s(L), s(L)),
        "bv": jax.random.uniform(ks[1], (1, D), jnp.float32, -s(L), s(L)),
        "wu": jax.random.uniform(ks[2], (L, D), jnp.float32, -s(L), s(L)),
        "bu": jax.random.uniform(ks[3], (1, D), jnp.float32, -s(L), s(L)),
        "w1": jax.random.uniform(ks[4], (D, K), jnp.float32, -s(D), s(D)),
        "b1": jax.random.uniform(ks[5], (1, 1), jnp.float32, -s(D), s(D)),
        "w2": jax.random.uniform(ks[6], (D, K), jnp.float32, -s(D), s(D)),
        "b2": jax.random.uniform(ks[7], (1, 1), jnp.float32, -s(D), s(D)),
    }


def reference(x, p):
    """Pure-JAX f32 reference matching the PyTorch forward."""
    a_v = jnp.tanh(x @ p["wv"] + p["bv"][0])
    a_u = jax.nn.sigmoid(x @ p["wu"] + p["bu"][0])
    g = a_v * a_u
    l1 = (g @ p["w1"])[..., 0] + p["b1"][0, 0]
    l2 = (g @ p["w2"])[..., 0] + p["b2"][0, 0]
    a1 = jax.nn.softmax(l1, axis=-1)
    a2 = jax.nn.softmax(l2, axis=-1)
    m1 = jnp.einsum("bnl,bn->bl", x, a1)
    m2 = jnp.einsum("bnl,bn->bl", x, a2)
    return m1, m2, a1, a2


if __name__ == "__main__":
    key = jax.random.PRNGKey(0)
    kx, kp = jax.random.split(key)

    B, N = 16, 32
    x = jax.random.normal(kx, (B, N, L), dtype=jnp.float32)
    params = init_params(kp)

    outs = jax.block_until_ready(gated_attention(x, params))
    refs = reference(x, params)

    # Tolerances account for bf16 x / bf16 weights on the matmuls (f32 accum).
    tols = {"M1": 2e-2, "M2": 2e-2, "A1": 5e-3, "A2": 5e-3}
    for name, o, r in zip(("M1", "M2", "A1", "A2"), outs, refs):
        assert o.shape == r.shape, (name, o.shape, r.shape)
        err = float(jnp.max(jnp.abs(o - r)))
        assert err < tols[name], (name, err)

    print("KERNEL_OK")
</pallas_src>

<mosaic_0001>
module attributes {stable_mosaic.version = 11 : i64} {
  func.func @_gated_attention_kernel(%arg0: i32, %arg1: memref<8x32x512xbf16, #tpu.memory_space<vmem>>, %arg2: memref<512x256xbf16, #tpu.memory_space<vmem>>, %arg3: memref<1x256xf32, #tpu.memory_space<vmem>>, %arg4: memref<128x2xf32, #tpu.memory_space<vmem>>, %arg5: memref<1x2xf32, #tpu.memory_space<vmem>>, %arg6: memref<16x512xf32, #tpu.memory_space<vmem>>, %arg7: memref<16x32xf32, #tpu.memory_space<vmem>>) attributes {dimension_semantics = [#tpu.dimension_semantics<parallel>], iteration_bounds = array<i64: 2>, scalar_prefetch = 0 : i64, scratch_operands = 0 : i64, tpu.core_type = #tpu.core_type<tc>, window_params = [{transform_indices = @transform_0, window_bounds = array<i64: 8, 32, 512>}, {pipeline_mode = #tpu.pipeline_mode<synchronous>, transform_indices = @transform_1, window_bounds = array<i64: 512, 256>}, {pipeline_mode = #tpu.pipeline_mode<synchronous>, transform_indices = @transform_2, window_bounds = array<i64: 1, 256>}, {pipeline_mode = #tpu.pipeline_mode<synchronous>, transform_indices = @transform_3, window_bounds = array<i64: 128, 2>}, {pipeline_mode = #tpu.pipeline_mode<synchronous>, transform_indices = @transform_4, window_bounds = array<i64: 1, 2>}, {transform_indices = @transform_5, window_bounds = array<i64: 16, 512>}, {transform_indices = @transform_6, window_bounds = array<i64: 16, 32>}]} {
    %c0 = arith.constant 0 : index
    %c0_0 = arith.constant 0 : index
    %c0_1 = arith.constant 0 : index
    %0 = vector.load %arg1[%c0, %c0_0, %c0_1] : memref<8x32x512xbf16, #tpu.memory_space<vmem>>, vector<8x32x512xbf16>
    %1 = vector.shape_cast %0 : vector<8x32x512xbf16> to vector<256x512xbf16>
    %c0_2 = arith.constant 0 : index
    %c0_3 = arith.constant 0 : index
    %2 = vector.load %arg2[%c0_2, %c0_3] : memref<512x256xbf16, #tpu.memory_space<vmem>>, vector<512x256xbf16>
    %cst = arith.constant dense<0.000000e+00> : vector<256x256xf32>
    %3 = tpu.matmul %1, %2, %cst {dimension_numbers = #tpu.dot_dimension_numbers<[1], [0], [0], [1], [0, 0, 1, 1], [], []>} : vector<256x512xbf16>, vector<512x256xbf16>, vector<256x256xf32> -> vector<256x256xf32>
    %c0_4 = arith.constant 0 : index
    %c0_5 = arith.constant 0 : index
    %4 = vector.load %arg3[%c0_4, %c0_5] : memref<1x256xf32, #tpu.memory_space<vmem>>, vector<1x256xf32>
    %5 = vector.broadcast %4 : vector<1x256xf32> to vector<256x256xf32>
    %6 = arith.addf %3, %5 : vector<256x256xf32>
    %7 = vector.extract_strided_slice %6 {offsets = [0, 0], sizes = [256, 128], strides = [1, 1]} : vector<256x256xf32> to vector<256x128xf32>
    %8 = math.tanh %7 : vector<256x128xf32>
    %9 = vector.extract_strided_slice %6 {offsets = [0, 128], sizes = [256, 128], strides = [1, 1]} : vector<256x256xf32> to vector<256x128xf32>
    %10 = arith.negf %9 : vector<256x128xf32>
    %11 = math.exp %10 : vector<256x128xf32>
    %cst_6 = arith.constant 1.000000e+00 : f32
    %12 = vector.broadcast %cst_6 : f32 to vector<256x128xf32>
    %13 = arith.addf %12, %11 : vector<256x128xf32>
    %14 = arith.divf %12, %13 : vector<256x128xf32>
    %15 = arith.mulf %8, %14 : vector<256x128xf32>
    %c0_7 = arith.constant 0 : index
    %c0_8 = arith.constant 0 : index
    %16 = vector.load %arg4[%c0_7, %c0_8] : memref<128x2xf32, #tpu.memory_space<vmem>>, vector<128x2xf32>
    %cst_9 = arith.constant dense<0.000000e+00> : vector<256x2xf32>
    %17 = tpu.matmul %15, %16, %cst_9 {dimension_numbers = #tpu.dot_dimension_numbers<[1], [0], [0], [1], [0, 0, 1, 1], [], []>} : vector<256x128xf32>, vector<128x2xf32>, vector<256x2xf32> -> vector<256x2xf32>
    %c0_10 = arith.constant 0 : index
    %c0_11 = arith.constant 0 : index
    %18 = vector.load %arg5[%c0_10, %c0_11] : memref<1x2xf32, #tpu.memory_space<vmem>>, vector<1x2xf32>
    %19 = vector.broadcast %18 : vector<1x2xf32> to vector<256x2xf32>
    %20 = arith.addf %17, %19 : vector<256x2xf32>
    %21 = vector.shape_cast %20 : vector<256x2xf32> to vector<8x32x2xf32>
    %22 = tpu.transpose %21, [0, 2, 1] : vector<8x32x2xf32> -> vector<8x2x32xf32>
    %cst_12 = arith.constant dense<0xFF800000> : vector<8x2xf32>
    %23 = vector.multi_reduction <maximumf>, %22, %cst_12 [2] : vector<8x2x32xf32> to vector<8x2xf32>
    %24 = vector.shape_cast %23 : vector<8x2xf32> to vector<8x2x1xf32>
    %25 = vector.broadcast %24 : vector<8x2x1xf32> to vector<8x2x32xf32>
    %26 = arith.subf %22, %25 : vector<8x2x32xf32>
    %27 = math.exp %26 : vector<8x2x32xf32>
    %cst_13 = arith.constant dense<0.000000e+00> : vector<8x2xf32>
    %28 = vector.multi_reduction <add>, %27, %cst_13 [2] : vector<8x2x32xf32> to vector<8x2xf32>
    %29 = vector.shape_cast %28 : vector<8x2xf32> to vector<8x2x1xf32>
    %30 = tpu.reciprocal %29 {approx = true} : vector<8x2x1xf32> -> vector<8x2x1xf32>
    %31 = arith.mulf %29, %30 : vector<8x2x1xf32>
    %cst_14 = arith.constant 2.000000e+00 : f32
    %32 = vector.broadcast %cst_14 : f32 to vector<8x2x1xf32>
    %33 = arith.subf %32, %31 : vector<8x2x1xf32>
    %34 = arith.mulf %30, %33 : vector<8x2x1xf32>
    %35 = vector.broadcast %34 : vector<8x2x1xf32> to vector<8x2x32xf32>
    %36 = arith.mulf %27, %35 : vector<8x2x32xf32>
    %37 = vector.shape_cast %36 : vector<8x2x32xf32> to vector<16x32xf32>
    %c0_15 = arith.constant 0 : index
    %c0_16 = arith.constant 0 : index
    %38 = vector.load %arg7[%c0_15, %c0_16] : memref<16x32xf32, #tpu.memory_space<vmem>>, vector<16x32xf32>
    tpu.vector_store %arg7[%c0_15, %c0_16], %37 {strides = array<i32>} : memref<16x32xf32, #tpu.memory_space<vmem>>, vector<16x32xf32>,
    %39 = arith.truncf %36 : vector<8x2x32xf32> to vector<8x2x32xbf16>
    "tpu.trace_start"() <{level = 10 : i32, message = "bkn,bnl->bkl"}> : () -> ()
    %cst_17 = arith.constant dense<0.000000e+00> : vector<8x2x512xf32>
    %40 = tpu.matmul %39, %0, %cst_17 {dimension_numbers = #tpu.dot_dimension_numbers<[2], [1], [1], [2], [0, 0, 0, 1, 1, 2], [0], [0]>} : vector<8x2x32xbf16>, vector<8x32x512xbf16>, vector<8x2x512xf32> -> vector<8x2x512xf32>
    "tpu.trace_stop"() : () -> ()
    %41 = vector.shape_cast %40 : vector<8x2x512xf32> to vector<16x512xf32>
    %c0_18 = arith.constant 0 : index
    %c0_19 = arith.constant 0 : index
    %42 = vector.load %arg6[%c0_18, %c0_19] : memref<16x512xf32, #tpu.memory_space<vmem>>, vector<16x512xf32>
    tpu.vector_store %arg6[%c0_18, %c0_19], %41 {strides = array<i32>} : memref<16x512xf32, #tpu.memory_space<vmem>>, vector<16x512xf32>,
    return
  }
  func.func @transform_0(%arg0: i32) -> (i32, i32, i32) {
    %c0_i32 = arith.constant 0 : i32
    %c0_i32_0 = arith.constant 0 : i32
    %c0_i32_1 = arith.constant 0 : i32
    return %arg0, %c0_i32, %c0_i32_0 : i32, i32, i32
  }
  func.func @transform_1(%arg0: i32) -> (i32, i32) {
    %c0_i32 = arith.constant 0 : i32
    %c0_i32_0 = arith.constant 0 : i32
    %c0_i32_1 = arith.constant 0 : i32
    return %c0_i32, %c0_i32_0 : i32, i32
  }
  func.func @transform_2(%arg0: i32) -> (i32, i32) {
    %c0_i32 = arith.constant 0 : i32
    %c0_i32_0 = arith.constant 0 : i32
    %c0_i32_1 = arith.constant 0 : i32
    return %c0_i32, %c0_i32_0 : i32, i32
  }
  func.func @transform_3(%arg0: i32) -> (i32, i32) {
    %c0_i32 = arith.constant 0 : i32
    %c0_i32_0 = arith.constant 0 : i32
    %c0_i32_1 = arith.constant 0 : i32
    return %c0_i32, %c0_i32_0 : i32, i32
  }
  func.func @transform_4(%arg0: i32) -> (i32, i32) {
    %c0_i32 = arith.constant 0 : i32
    %c0_i32_0 = arith.constant 0 : i32
    %c0_i32_1 = arith.constant 0 : i32
    return %c0_i32, %c0_i32_0 : i32, i32
  }
  func.func @transform_5(%arg0: i32) -> (i32, i32) {
    %c0_i32 = arith.constant 0 : i32
    %c0_i32_0 = arith.constant 0 : i32
    return %arg0, %c0_i32 : i32, i32
  }
  func.func @transform_6(%arg0: i32) -> (i32, i32) {
    %c0_i32 = arith.constant 0 : i32
    %c0_i32_0 = arith.constant 0 : i32
    return %arg0, %c0_i32 : i32, i32
  }
}

</mosaic_0001>

<bundles_post_ra>
// kernel: tpu_custom_call.1
= control target key start
LH: loop header
LB: loop body
LE: loop exit
PB: predicated region body
PF: predicated region fallthrough
CT: control target
= control target key end

     0   :  { %12 = vsyncpa [#allocation3], 0  ;;  %s5373_s0 = inlined_call_operand.hbm [shape: bf16[16,32,512], index: 0, kind: input, shape index: {}]   ;;  %s5374_s1 = inlined_call_operand.hbm [shape: bf16[512,256], index: 1, kind: input, shape index: {}]   ;;  %s5375_s2 = inlined_call_operand.vmem [shape: f32[1,256], index: 2, kind: input, shape index: {}]   ;;  %s5376_s3 = inlined_call_operand.vmem [shape: f32[128,2], index: 3, kind: input, shape index: {}]   ;;  %s5377_s4 = inlined_call_operand.vmem [shape: f32[1,2], index: 4, kind: input, shape index: {}]   ;;  %s5378_s5 = inlined_call_operand.hbm [shape: f32[32,512], index: 5, kind: output, shape index: {0}]   ;;  %s5379_s6 = inlined_call_operand.hbm [shape: f32[32,32], index: 6, kind: output, shape index: {1}]  }
   0x1   :  { %14 = vsyncpa [#allocation3 + $0x1], 0 }
   0x2   :  { %15 = vsyncpa [#allocation6], 0 }
   0x3   :  { %16 = vsyncpa [#allocation4], 0 }
   0x4   :  { %18 = vsyncpa [#allocation4 + $0x1], 0 }
   0x5   :  { %19 = vsyncpa [#allocation9], 0 }
   0x6   :  { %21 = vsyncpa [#allocation9 + $0x1], 0  ;;  %s4568_s21 = smov 0   ;;  %s4570_s22 = smov 0  }
   0x7   :  { %s4572_s23 = smov 0   ;;  %s4574_s24 = smov 0  }
   0x8 LB: > { %s4589_s25 = sadd.s32 4294967295, %s4517_s24   ;;  %s3482_s26 = sadd.s32 4294967294, %s4517_s24   ;;  %s4517_s24 = sphi %s4574_s24, %s5401_s24   ;;  %s4513_s23 = sphi %s4572_s23, %s5400_s23   ;;  %s4509_s22 = sphi %s4570_s22, %s5399_s22   ;;  %s4505_s21 = sphi %s4568_s21, %s5398_s21  }
   0x9   : > { %p47_p0 = scmp.ne.s32.totalorder %s4509_s22, %s4505_s21  ;;  %p5380_p1 = scmp.eq.s32.totalorder %s4589_s25, 0 }
   0xa   : > { %p161_p3 = scmp.eq.s32.totalorder %s3482_s26, 1  ;;  %p3483_p5 = scmp.ge.s32.totalorder %s4517_s24, 1 }
   0xb   : > { %p4598_p4 = por %p5380_p1, %p47_p0  ;;  %p194_p7 = scmp.lt.s32.totalorder %s4517_s24, 3 }
   0xc   : > { %p4603_p6 = por %p161_p3, %p47_p0  ;;  %s4519_s30 = smov [#allocation5]  }
   0xd   : > { %s5384_s27 = scalar_select %p4598_p4, 1, 0 }
   0xe   : > { %s5385_s28 = scalar_select %p4603_p6, 1, 0 }
   0xf   : > { %p4608_p8 = pnand %p3483_p5, %p194_p7  ;;  %s206_s7 = sshll.u32 %s4519_s30, 4  ;;  %s207_s7 = int_to_ptr.vmem [resolvable:$true] %s206_s7 }
  0x10   : > { %s4622_s9 = sadd.s32 1, %s4517_s24   ;;  %s34_s10 = sadd.s32 1, %s4513_s23 }
  0x11   : > { %s5386_s29 = scalar_select %p4608_p8, 1, 0 }
  0x12   : > { %p3832_p9 = pneg %p4608_p8  ;;  %s31_s11 = ssub.s32 %s4517_s24, %s4622_s9 }
  0x13   : > { %s4376_s12 = scalar_lea.vmem %s207_s7, 8192  ;;  %p4384_p5 = scmp.lt.s32.totalorder %s207_s7, %s207_s7 }
  0x14   : > { %p4617_p11 = pnand %p3832_p9, %p5380_p1  ;;  %p4377_p13 = scmp.ne.s32.totalorder %s207_s7, %s4376_s12 }
  0x15   : > { %p4385_p7 = scmp.lt.s32.totalorder %s4376_s12, %s4376_s12 }
  0x16   : > { %p4367_p12 = pneg %p4617_p11 }
  0x17   : > { %p4386_p10 = por %p4385_p7, %p4384_p5 }
  0x18   : > { %p4379_p0 = pnand %p4377_p13, %p4367_p12 }
  0x1a   : > { %p4380_p3 = pneg %p4379_p0 }
  0x1c   : > { %p4387_p2 = pnand %p4386_p10, %p4380_p3 }
  0x1e   : > { %4390 = shalt.err (!%p4387_p2)
}
  0x1f   : > { %s4520_s13 = smov 128   ;;  %s4521_s14 = smov 8  }
  0x20   : > { %3835 = dma.hbm_to_vmem [thread:$0]  (!%p4617_p11), %s5374_s1, 8192, %s207_s7, [#allocation6], %s4520_s13, %s4520_s13, %s4521_s14  }
  0x21   : > { %p32_p9 = scmp.eq.s32.totalorder %s31_s11, 0  ;;  %p41_p12 = scmp.ne.s32.totalorder %s4513_s23, %s4509_s22 }
  0x22   : > { %p42_p10 = scmp.eq.s32.totalorder %s4517_s24, 0  ;;  %p3848_p2 = scmp.lt.s32.totalorder %s4517_s24, 2 }
  0x23   : > { %s4639_s17 = scalar_select %p32_p9, %s4513_s23, %s34_s10  }
  0x24   : > { %p43_p13 = por %p42_p10, %p41_p12  ;;  %p5388_p0 = scmp.eq.s32.totalorder %s4589_s25, 1 }
  0x25   : > { %s229_s19 = sand.u32 1, %s4513_s23   ;;  %s3690_s20 = sshll.u32 %s4517_s24, 13 }
  0x26   : > { %p4643_p3 = por %p5388_p0, %p41_p12  ;;  %s3486_s26 = sshll.u32 %s229_s19, 9 }
  0x27   : > { %s4652_s12 = scalar_lea.hbm %s5373_s0, %s3690_s20  ;;  %s233_s7 = scalar_lea.vmem [#allocation2], %s3486_s26 }
  0x28   : > { %s5389_s18 = scalar_select %p4643_p3, 1, 0 }
  0x29   : > { %s241_s10 = sshll.u32 %s233_s7, 4  ;;  %p4654_p11 = pnand %p3848_p2, %p43_p13  ;;  %s4658_s10 = int_to_ptr.vmem [resolvable:$true] %s241_s10 }
  0x2a   : > { %s4660_s13 = scalar_lea.sflag [#allocation3], %s229_s19  ;;  %s4391_s14 = scalar_lea.hbm %s4652_s12, 8192 }
  0x2b   : > { %p4392_p5 = scmp.ne.s32.totalorder %s4652_s12, %s4391_s14  ;;  %p4393_p7 = pneg %p4654_p11 }
  0x2c   : > { %s4396_s20 = scalar_lea.hbm %s5373_s0, 16384  ;;  %p4397_p10 = scmp.lt.s32.totalorder %s4652_s12, %s5373_s0 }
  0x2d   : > { %p4394_p9 = pnand %p4393_p7, %p4392_p5  ;;  %p4398_p2 = scmp.lt.s32.totalorder %s4396_s20, %s4391_s14 }
  0x2f   : > { %p4395_p12 = pneg %p4394_p9  ;;  %p4399_p13 = por %p4398_p2, %p4397_p10 }
  0x31   : > { %p4400_p0 = pnand %p4399_p13, %p4395_p12 }
  0x33   : > { %4403 = shalt.err (!%p4400_p0)
}
  0x34   : > { %s4404_s19 = scalar_lea.vmem %s4658_s10, 8192  ;;  %s4522_s8 = smov [#allocation2]  }
  0x35   : > { %p4405_p1 = scmp.ne.s32.totalorder %s4658_s10, %s4404_s19  ;;  %s4409_s7 = sshll.u32 %s4522_s8, 4  ;;  %s4410_s7 = int_to_ptr.vmem [resolvable:$false] %s4409_s7 }
  0x36   : > { %s4411_s15 = scalar_lea.vmem %s4410_s7, 16384  ;;  %p4412_p9 = scmp.lt.s32.totalorder %s4658_s10, %s4410_s7 }
  0x37   : > { %p4407_p6 = pnand %p4405_p1, %p4393_p7  ;;  %p4413_p3 = scmp.lt.s32.totalorder %s4411_s15, %s4404_s19 }
  0x39   : > { %p4408_p5 = pneg %p4407_p6  ;;  %p4414_p4 = por %p4413_p3, %p4412_p9 }
  0x3b   : > { %p4415_p8 = pnand %p4414_p4, %p4408_p5 }
  0x3d   : > { %4418 = shalt.err (!%p4415_p8)
}
  0x3e   : > { %s4523_s14 = smov 256   ;;  %s4524_s16 = smov 16  }
  0x3f   : > { %3839 = dma.hbm_to_vmem [thread:$0]  (!%p4654_p11), %s4652_s12, 8192, %s4658_s10, %s4660_s13, %s4523_s14, %s4523_s14, %s4524_s16  }
  0x40   : > { %p5391_p1 = scmp.ne.s32.totalorder %s5386_s29, 0 }
  0x41   : > { %s4684_s20 = sand.u32 (!%p5391_p1), 1, %s4509_s22   ;;  %p5392_p4 = scmp.ne.s32.totalorder (!%p5391_p1), %s5384_s27, 0 }
  0x42   : > { %253 = sbr.rel (%p5391_p1) target bundleno = 1442 (0x5a2), region = 40  ;;  %s3491_s26 = sshll.u32 (!%p5391_p1), %s4684_s20, 9 }
  0x43   : > { %s256_s30 = scalar_lea.sflag (!%p5391_p1), [#allocation3], %s4684_s20  ;;  %s4688_s19 = scalar_lea.vmem (!%p5391_p1), [#allocation2], %s3491_s26 }
  0x47   : > { %4488 = dma.done.wait (%p5392_p4), %s256_s30, 8192  }
  0x48   : > { %4490 = vsyncadd (%p5392_p4), %s256_s30, 4294959104  ;;  %p5393_p6 = scmp.eq.s32.totalorder %s4589_s25, 0 }
  0x4a   : > { %4492 = dma.done.wait (%p5393_p6), [#allocation6], 8192   ;;  %p5394_p8 = pmov %p5393_p6 }
  0x4b   : > { %v3895_v0 = vld [vmem:[#allocation5 + $0x74] ss:$8 sps:$4 sm:$0xff]   ;;  %v3899_v2 = vld [vmem:[#allocation5 + $0x70] ss:$8 sps:$4 sm:$0xff]   ;;  %v3901_v4 = vld [vmem:[#allocation5 + $0x64] ss:$8 sps:$4 sm:$0xff]  }
  0x4c   : > { %4494 = vsyncadd (%p5394_p8), [#allocation6], 4294959104  ;;  %v3897_v1 = vld [vmem:[#allocation5 + $0x174] ss:$8 sps:$4 sm:$0xff]   ;;  %1081 = vmatprep.subr.bf16.mxu0 %v3895_v0  ;;  %v3900_v3 = vld [vmem:[#allocation5 + $0x170] ss:$8 sps:$4 sm:$0xff]  }
  0x4d   : > { %1274 = vmatprep.subr.bf16.mxu1 %v3897_v1  ;;  %1082 = vmatpush1.bf16.msra.mxu0 %v3899_v2  ;;  %v3903_v5 = vld [vmem:[#allocation5 + $0x164] ss:$8 sps:$4 sm:$0xff]   ;;  %v3905_v6 = vld [vmem:[#allocation5 + $0x60] ss:$8 sps:$4 sm:$0xff]   ;;  %v3907_v8 = vld [vmem:[#allocation5 + $0x54] ss:$8 sps:$4 sm:$0xff]  }
  0x4e   : > { %1275 = vmatpush1.bf16.msra.mxu1 %v3900_v3  ;;  %1083 = vmatprep.subr.bf16.mxu0 %v3901_v4  ;;  %v3906_v7 = vld [vmem:[#allocation5 + $0x160] ss:$8 sps:$4 sm:$0xff]   ;;  %v3909_v9 = vld [vmem:[#allocation5 + $0x154] ss:$8 sps:$4 sm:$0xff]   ;;  %v3911_v10 = vld [vmem:[#allocation5 + $0x50] ss:$8 sps:$4 sm:$0xff]  }
  0x4f   : > { %1276 = vmatprep.subr.bf16.mxu1 %v3903_v5  ;;  %v3912_v11 = vld [vmem:[#allocation5 + $0x150] ss:$8 sps:$4 sm:$0xff]   ;;  %v3913_v12 = vld [vmem:[#allocation5 + $0x44] ss:$8 sps:$4 sm:$0xff]   ;;  %v3917_v14 = vld [vmem:[#allocation5 + $0x40] ss:$8 sps:$4 sm:$0xff]  }
  0x50   : > { %v3915_v13 = vld [vmem:[#allocation5 + $0x144] ss:$8 sps:$4 sm:$0xff]   ;;  %v3918_v15 = vld [vmem:[#allocation5 + $0x140] ss:$8 sps:$4 sm:$0xff]   ;;  %v3919_v16 = vld [vmem:[#allocation5 + $0x34] ss:$8 sps:$4 sm:$0xff]  }
  0x51   : > { %1084 = vmatpush1.bf16.msra.mxu0 %v3905_v6  ;;  %v3921_v17 = vld [vmem:[#allocation5 + $0x134] ss:$8 sps:$4 sm:$0xff]   ;;  %v3923_v18 = vld [vmem:[#allocation5 + $0x30] ss:$8 sps:$4 sm:$0xff]   ;;  %v3925_v20 = vld [vmem:[#allocation5 + $0x24] ss:$8 sps:$4 sm:$0xff]  }
  0x52   : > { %1277 = vmatpush1.bf16.msra.mxu1 %v3906_v7  ;;  %1085 = vmatprep.subr.bf16.mxu0 %v3907_v8  ;;  %v3924_v19 = vld [vmem:[#allocation5 + $0x130] ss:$8 sps:$4 sm:$0xff]   ;;  %v3927_v21 = vld [vmem:[#allocation5 + $0x124] ss:$8 sps:$4 sm:$0xff]   ;;  %v3929_v22 = vld [vmem:[#allocation5 + $0x20] ss:$8 sps:$4 sm:$0xff]  }
  0x53   : > { %1278 = vmatprep.subr.bf16.mxu1 %v3909_v9  ;;  %v3930_v23 = vld [vmem:[#allocation5 + $0x120] ss:$8 sps:$4 sm:$0xff]   ;;  %v3931_v24 = vld [vmem:[#allocation5 + $0x14] ss:$8 sps:$4 sm:$0xff]   ;;  %v3935_v26 = vld [vmem:[#allocation5 + $0x10] ss:$8 sps:$4 sm:$0xff]  }
  0x54   : > { %v3933_v25 = vld [vmem:[#allocation5 + $0x114] ss:$8 sps:$4 sm:$0xff]   ;;  %v3936_v27 = vld [vmem:[#allocation5 + $0x110] ss:$8 sps:$4 sm:$0xff]   ;;  %v3937_v28 = vld [vmem:[#allocation5 + $0x4] ss:$8 sps:$4 sm:$0xff]  }
  0x55   : > { %1086 = vmatpush1.bf16.msra.mxu0 %v3911_v10  ;;  %v3939_v29 = vld [vmem:[#allocation5 + $0x104] ss:$8 sps:$4 sm:$0xff]   ;;  %v3941_v30 = vld [vmem:[#allocation5] ss:$8 sps:$4 sm:$0xff]   ;;  %v3943_v32 = vld [vmem:[#allocation5 + $0xf4] ss:$8 sps:$4 sm:$0xff]  }
  0x56   : > { %1279 = vmatpush1.bf16.msra.mxu1 %v3912_v11  ;;  %1087 = vmatprep.subr.bf16.mxu0 %v3913_v12  ;;  %v3942_v31 = vld [vmem:[#allocation5 + $0x100] ss:$8 sps:$4 sm:$0xff]   ;;  %v3945_v33 = vld [vmem:[#allocation5 + $0x1f4] ss:$8 sps:$4 sm:$0xff]   ;;  %v3947_v34 = vld [vmem:[#allocation5 + $0xf0] ss:$8 sps:$4 sm:$0xff]  }
  0x57   : > { %1280 = vmatprep.subr.bf16.mxu1 %v3915_v13  ;;  %v3948_v35 = vld [vmem:[#allocation5 + $0x1f0] ss:$8 sps:$4 sm:$0xff]   ;;  %v3949_v36 = vld [vmem:[#allocation5 + $0xe4] ss:$8 sps:$4 sm:$0xff]   ;;  %v3953_v38 = vld [vmem:[#allocation5 + $0xe0] ss:$8 sps:$4 sm:$0xff]  }
  0x58   : > { %v3951_v37 = vld [vmem:[#allocation5 + $0x1e4] ss:$8 sps:$4 sm:$0xff]   ;;  %v3954_v39 = vld [vmem:[#allocation5 + $0x1e0] ss:$8 sps:$4 sm:$0xff]   ;;  %v3955_v40 = vld [vmem:[#allocation5 + $0xd4] ss:$8 sps:$4 sm:$0xff]  }
  0x59   : > { %1088 = vmatpush1.bf16.msra.mxu0 %v3917_v14  ;;  %v3957_v41 = vld [vmem:[#allocation5 + $0x1d4] ss:$8 sps:$4 sm:$0xff]   ;;  %v3959_v42 = vld [vmem:[#allocation5 + $0xd0] ss:$8 sps:$4 sm:$0xff]   ;;  %v3961_v44 = vld [vmem:[#allocation5 + $0xc4] ss:$8 sps:$4 sm:$0xff]  }
  0x5a   : > { %1281 = vmatpush1.bf16.msra.mxu1 %v3918_v15  ;;  %1089 = vmatprep.subr.bf16.mxu0 %v3919_v16  ;;  %v3960_v43 = vld [vmem:[#allocation5 + $0x1d0] ss:$8 sps:$4 sm:$0xff]   ;;  %v3963_v45 = vld [vmem:[#allocation5 + $0x1c4] ss:$8 sps:$4 sm:$0xff]   ;;  %v3965_v46 = vld [vmem:[#allocation5 + $0xc0] ss:$8 sps:$4 sm:$0xff]  }
  0x5b   : > { %1282 = vmatprep.subr.bf16.mxu1 %v3921_v17  ;;  %v3966_v47 = vld [vmem:[#allocation5 + $0x1c0] ss:$8 sps:$4 sm:$0xff]   ;;  %v3967_v48 = vld [vmem:[#allocation5 + $0xb4] ss:$8 sps:$4 sm:$0xff]   ;;  %v3971_v52 = vld [vmem:[#allocation5 + $0xb0] ss:$8 sps:$4 sm:$0xff]  }
  0x5c   : > { %v3993_v49 = vld [vmem:[%s4688_s19 + $0x4] ss:$16 sps:$4 sm:$0xff]   ;;  %v3996_v51 = vld [vmem:[%s4688_s19 + $0xc] ss:$16 sps:$4 sm:$0xff]   ;;  %v3972_v53 = vld [vmem:[#allocation5 + $0x1b0] ss:$8 sps:$4 sm:$0xff]  }
  0x5d   : > { %1090 = vmatpush1.bf16.msra.mxu0 %v3923_v18  ;;  %v3969_v50 = vld [vmem:[#allocation5 + $0x1b4] ss:$8 sps:$4 sm:$0xff]   ;;  %1113 = vmatprep.mubr.bf16.mxu0 %v3993_v49  ;;  %v3973_v54 = vld [vmem:[#allocation5 + $0xa4] ss:$8 sps:$4 sm:$0xff]   ;;  %v3977_v56 = vld [vmem:[#allocation5 + $0xa0] ss:$8 sps:$4 sm:$0xff]  }
  0x5e   : > { %1283 = vmatpush1.bf16.msra.mxu1 %v3924_v19  ;;  %1091 = vmatprep.subr.bf16.mxu0 %v3925_v20  ;;  %v3975_v55 = vld [vmem:[#allocation5 + $0x1a4] ss:$8 sps:$4 sm:$0xff]   ;;  %v3978_v57 = vld [vmem:[#allocation5 + $0x1a0] ss:$8 sps:$4 sm:$0xff]   ;;  %v3979_v58 = vld [vmem:[#allocation5 + $0x94] ss:$8 sps:$4 sm:$0xff]  }
  0x5f   : > { %1284 = vmatprep.subr.bf16.mxu1 %v3927_v21  ;;  %1306 = vmatprep.mubr.bf16.mxu1 %v3996_v51  ;;  %v3981_v59 = vld [vmem:[#allocation5 + $0x194] ss:$8 sps:$4 sm:$0xff]   ;;  %v3983_v60 = vld [vmem:[#allocation5 + $0x90] ss:$8 sps:$4 sm:$0xff]   ;;  %v3985_v62 = vld [vmem:[#allocation5 + $0x84] ss:$8 sps:$4 sm:$0xff]  }
  0x60   : > { %v3984_v61 = vld [vmem:[#allocation5 + $0x190] ss:$8 sps:$4 sm:$0xff]   ;;  %v3987_v63 = vld [vmem:[#allocation5 + $0x184] ss:$8 sps:$4 sm:$0xff]   ;;  %v3989_v0 = vld [vmem:[#allocation5 + $0x80] ss:$8 sps:$4 sm:$0xff]  }
  0x61   : > { %1092 = vmatpush1.bf16.msra.mxu0 %v3929_v22  ;;  %v3990_v1 = vld [vmem:[#allocation5 + $0x180] ss:$8 sps:$4 sm:$0xff]   ;;  %v3997_v4 = vld [vmem:[%s4688_s19 + $0x24] ss:$16 sps:$4 sm:$0xff]   ;;  %v3999_v5 = vld [vmem:[%s4688_s19 + $0x2c] ss:$16 sps:$4 sm:$0xff]  }
  0x62   : > { %1285 = vmatpush1.bf16.msra.mxu1 %v3930_v23  ;;  %1093 = vmatprep.subr.bf16.mxu0 %v3931_v24  ;;  %v3991_v2 = vld [vmem:[%s4688_s19] ss:$16 sps:$4 sm:$0xff]   ;;  %v3994_v3 = vld [vmem:[%s4688_s19 + $0x8] ss:$16 sps:$4 sm:$0xff]   ;;  %v4003_v8 = vld [vmem:[%s4688_s19 + $0x44] ss:$16 sps:$4 sm:$0xff]  }
  0x63   : > { %1286 = vmatprep.subr.bf16.mxu1 %v3933_v25  ;;  %v4001_v6 = vld [vmem:[%s4688_s19 + $0x20] ss:$16 sps:$4 sm:$0xff]   ;;  %v4002_v7 = vld [vmem:[%s4688_s19 + $0x28] ss:$16 sps:$4 sm:$0xff]   ;;  %v4005_v9 = vld [vmem:[%s4688_s19 + $0x4c] ss:$16 sps:$4 sm:$0xff]  }
  0x64   : > { %v1738_v10 = vld [vmem:[%s5376_s3 + $0x78] sm:$0xff]  ;;  %v1737_v11 = vld [vmem:[%s5376_s3 + $0x70] sm:$0xff]  ;;  %v1736_v13 = vld [vmem:[%s5376_s3 + $0x68] sm:$0xff]  ;;  %vm2227_vm0 = vcmask 254976   ;;  %vm2384_vm1 = vcmask 261120   ;;  %s3494_s16 = sshll.u32 %s4684_s20, 4 }
  0x65   : > { %1094 = vmatpush1.bf16.msra.mxu0 %v3935_v26  ;;  %v4007_v12 = vld [vmem:[%s4688_s19 + $0x40] ss:$16 sps:$4 sm:$0xff]   ;;  %v4008_v14 = vld [vmem:[%s4688_s19 + $0x48] ss:$16 sps:$4 sm:$0xff]   ;;  %v4009_v15 = vld [vmem:[%s4688_s19 + $0x64] ss:$16 sps:$4 sm:$0xff]  }
  0x66   : > { %1287 = vmatpush1.bf16.msra.mxu1 %v3936_v27  ;;  %1095 = vmatprep.subr.bf16.mxu0 %v3937_v28  ;;  %v4011_v16 = vld [vmem:[%s4688_s19 + $0x6c] ss:$16 sps:$4 sm:$0xff]   ;;  %v1735_v17 = vld [vmem:[%s5376_s3 + $0x60] sm:$0xff]  ;;  %v1733_v19 = vld [vmem:[%s5376_s3 + $0x50] sm:$0xff]  ;;  %s5178_s26 = scalar_lea.vmem [#allocation8], %s3494_s16  ;;  %s3337_s10 = scalar_lea.sflag [#allocation9], %s4684_s20 }
  0x67   : > { %1288 = vmatprep.subr.bf16.mxu1 %v3939_v29  ;;  %v1734_v18 = vld [vmem:[%s5376_s3 + $0x58] sm:$0xff]  ;;  %v4013_v20 = vld [vmem:[%s4688_s19 + $0x60] ss:$16 sps:$4 sm:$0xff]   ;;  %v4015_v22 = vld [vmem:[%s4688_s19 + $0x84] ss:$16 sps:$4 sm:$0xff]   ;;  %s3367_s30 = sshll.u32 %s5178_s26, 4  ;;  %s5259_s30 = int_to_ptr.vmem [resolvable:$true] %s3367_s30 }
  0x68   : > { %v4014_v21 = vld [vmem:[%s4688_s19 + $0x68] ss:$16 sps:$4 sm:$0xff]   ;;  %v4017_v23 = vld [vmem:[%s4688_s19 + $0x8c] ss:$16 sps:$4 sm:$0xff]   ;;  %v1731_v25 = vld [vmem:[%s5376_s3 + $0x40] sm:$0xff]  ;;  %s4419_s11 = scalar_lea.vmem %s5259_s30, 256 }
  0x69   : > { %1096 = vmatpush1.bf16.msra.mxu0 %v3941_v30  ;;  %v1732_v24 = vld [vmem:[%s5376_s3 + $0x48] sm:$0xff]  ;;  %v1730_v26 = vld [vmem:[%s5376_s3 + $0x38] sm:$0xff]  ;;  %v4019_v27 = vld [vmem:[%s4688_s19 + $0x80] ss:$16 sps:$4 sm:$0xff]   ;;  %p4420_p3 = scmp.ne.s32.totalorder %s5259_s30, %s4419_s11  ;;  %p5395_p11 = scmp.ne.s32.totalorder %s5389_s18, 0 }
  0x6a   : > { %1289 = vmatpush1.bf16.msra.mxu1 %v3942_v31  ;;  %1097 = vmatprep.subr.bf16.mxu0 %v3943_v32  ;;  %v4020_v28 = vld [vmem:[%s4688_s19 + $0x88] ss:$16 sps:$4 sm:$0xff]   ;;  %v4021_v29 = vld [vmem:[%s4688_s19 + $0xa4] ss:$16 sps:$4 sm:$0xff]   ;;  %v4023_v30 = vld [vmem:[%s4688_s19 + $0xac] ss:$16 sps:$4 sm:$0xff]  }
  0x6b   : > { %1290 = vmatprep.subr.bf16.mxu1 %v3945_v33  ;;  %v4025_v31 = vld [vmem:[%s4688_s19 + $0xa0] ss:$16 sps:$4 sm:$0xff]   ;;  %v4026_v32 = vld [vmem:[%s4688_s19 + $0xa8] ss:$16 sps:$4 sm:$0xff]   ;;  %v4027_v33 = vld [vmem:[%s4688_s19 + $0xc4] ss:$16 sps:$4 sm:$0xff]   ;;  %p4421_p7 = pnand %p4420_p3, %p5395_p11 }
  0x6c   : > { %v4053_v51 = vld [vmem:[%s4688_s19 + $0x140] ss:$16 sps:$4 sm:$0xff]   ;;  %s4527_s13 = smov [#allocation8]  }
  0x6d   : > { %1098 = vmatpush2.bf16.msra.mxu0 %v3947_v34  ;;  %v4030_v34 = vld [vmem:[%s4688_s19 + $0xcc] ss:$16 sps:$4 sm:$0xff]   ;;  %p4422_p12 = pneg %p4421_p7  ;;  %s4423_s8 = sshll.u32 %s4527_s13, 4  ;;  %s4424_s8 = int_to_ptr.vmem [resolvable:$false] %s4423_s8 }
  0x6e   : > { %1291 = vmatpush2.bf16.msra.mxu1 %v3948_v35  ;;  %1099 = vmatprep.subr.bf16.mxu0 %v3949_v36  ;;  %v4029_v35 = vld [vmem:[%s4688_s19 + $0xc0] ss:$16 sps:$4 sm:$0xff]   ;;  %v4032_v36 = vld [vmem:[%s4688_s19 + $0xc8] ss:$16 sps:$4 sm:$0xff]   ;;  %s4425_s7 = scalar_lea.vmem %s4424_s8, 512  ;;  %p4426_p10 = scmp.lt.s32.totalorder %s5259_s30, %s4424_s8 }
  0x6f   : > { %1292 = vmatprep.subr.bf16.mxu1 %v3951_v37  ;;  %v4033_v37 = vld [vmem:[%s4688_s19 + $0xe4] ss:$16 sps:$4 sm:$0xff]   ;;  %p4427_p2 = scmp.lt.s32.totalorder %s4425_s7, %s4419_s11 }
  0x71   : > { %1100 = vmatpush2.bf16.msra.mxu0 %v3953_v38  ;;  %v4036_v38 = vld [vmem:[%s4688_s19 + $0xec] ss:$16 sps:$4 sm:$0xff]   ;;  %p4428_p13 = por %p4427_p2, %p4426_p10 }
  0x72   : > { %1293 = vmatpush2.bf16.msra.mxu1 %v3954_v39  ;;  %1101 = vmatprep.subr.bf16.mxu0 %v3955_v40  ;;  %v4035_v39 = vld [vmem:[%s4688_s19 + $0xe0] ss:$16 sps:$4 sm:$0xff]   ;;  %v4038_v40 = vld [vmem:[%s4688_s19 + $0xe8] ss:$16 sps:$4 sm:$0xff]  }
  0x73   : > { %1294 = vmatprep.subr.bf16.mxu1 %v3957_v41  ;;  %v4758_v41 = vld [vmem:[%s4688_s19 + $0x104] ss:$16 sps:$4 sm:$0xff]   ;;  %p4429_p0 = pnand %p4428_p13, %p4422_p12 }
  0x75   : > { %1102 = vmatpush2.bf16.msra.mxu0 %v3959_v42  ;;  %v4042_v42 = vld [vmem:[%s4688_s19 + $0x10c] ss:$16 sps:$4 sm:$0xff]  }
  0x76   : > { %1295 = vmatpush2.bf16.msra.mxu1 %v3960_v43  ;;  %1103 = vmatprep.subr.bf16.mxu0 %v3961_v44  ;;  %v4763_v43 = vld [vmem:[%s4688_s19 + $0x100] ss:$16 sps:$4 sm:$0xff]   ;;  %v4044_v44 = vld [vmem:[%s4688_s19 + $0x108] ss:$16 sps:$4 sm:$0xff]  }
  0x77   : > { %1296 = vmatprep.subr.bf16.mxu1 %v3963_v45  ;;  %v4767_v45 = vld [vmem:[%s4688_s19 + $0x124] ss:$16 sps:$4 sm:$0xff]  }
  0x79   : > { %1104 = vmatpush2.bf16.msra.mxu0 %v3965_v46  ;;  %v4048_v46 = vld [vmem:[%s4688_s19 + $0x12c] ss:$16 sps:$4 sm:$0xff]  }
  0x7a   : > { %1297 = vmatpush2.bf16.msra.mxu1 %v3966_v47  ;;  %1105 = vmatprep.subr.bf16.mxu0 %v3967_v48  ;;  %v4773_v47 = vld [vmem:[%s4688_s19 + $0x120] ss:$16 sps:$4 sm:$0xff]   ;;  %v4050_v48 = vld [vmem:[%s4688_s19 + $0x128] ss:$16 sps:$4 sm:$0xff]  }
  0x7b   : > { %1298 = vmatprep.subr.bf16.mxu1 %v3969_v50  ;;  %v4054_v50 = vld [vmem:[%s4688_s19 + $0x14c] ss:$16 sps:$4 sm:$0xff]  }
  0x7d   : > { %1106 = vmatpush2.bf16.msra.mxu0 %v3971_v52  ;;  %v4056_v52 = vld [vmem:[%s4688_s19 + $0x148] ss:$16 sps:$4 sm:$0xff]  }
  0x7e   : > { %1299 = vmatpush2.bf16.msra.mxu1 %v3972_v53  ;;  %1107 = vmatprep.subr.bf16.mxu0 %v3973_v54  ;;  %v4782_v53 = vld [vmem:[%s4688_s19 + $0x164] ss:$16 sps:$4 sm:$0xff]   ;;  %v4060_v54 = vld [vmem:[%s4688_s19 + $0x16c] ss:$16 sps:$4 sm:$0xff]  }
  0x7f   : > { %1300 = vmatprep.subr.bf16.mxu1 %v3975_v55  ;;  %v4059_v55 = vld [vmem:[%s4688_s19 + $0x160] ss:$16 sps:$4 sm:$0xff]  }
  0x81   : > { %1108 = vmatpush2.bf16.msra.mxu0 %v3977_v56  ;;  %v4062_v56 = vld [vmem:[%s4688_s19 + $0x168] ss:$16 sps:$4 sm:$0xff]  }
  0x82   : > { %1301 = vmatpush2.bf16.msra.mxu1 %v3978_v57  ;;  %1109 = vmatprep.subr.bf16.mxu0 %v3979_v58  ;;  %v4063_v57 = vld [vmem:[%s4688_s19 + $0x184] ss:$16 sps:$4 sm:$0xff]   ;;  %v4066_v58 = vld [vmem:[%s4688_s19 + $0x18c] ss:$16 sps:$4 sm:$0xff]  }
  0x83   : > { %1302 = vmatprep.subr.bf16.mxu1 %v3981_v59  ;;  %v1729_v59 = vld [vmem:[%s5376_s3 + $0x30] sm:$0xff] }
  0x85   : > { %1110 = vmatpush2.bf16.msra.mxu0 %v3983_v60  ;;  %v4065_v60 = vld [vmem:[%s4688_s19 + $0x180] ss:$16 sps:$4 sm:$0xff]  }
  0x86   : > { %1303 = vmatpush2.bf16.msra.mxu1 %v3984_v61  ;;  %1111 = vmatprep.subr.bf16.mxu0 %v3985_v62  ;;  %v4068_v61 = vld [vmem:[%s4688_s19 + $0x188] ss:$16 sps:$4 sm:$0xff]   ;;  %v4069_v62 = vld [vmem:[%s4688_s19 + $0x1a4] ss:$16 sps:$4 sm:$0xff]  }
  0x87   : > { %1304 = vmatprep.subr.bf16.mxu1 %v3987_v63  ;;  %v4072_v63 = vld [vmem:[%s4688_s19 + $0x1ac] ss:$16 sps:$4 sm:$0xff]  }
  0x89   : > { %1112 = vmatpush2.bf16.msra.mxu0 %v3989_v0  ;;  %v1728_v0 = vld [vmem:[%s5376_s3 + $0x28] sm:$0xff] }
  0x8a   : > { %1305 = vmatpush2.bf16.msra.mxu1 %v3990_v1  ;;  %3742 = vmatprep.subr.mxu0 %v1738_v10  ;;  %v4071_v1 = vld [vmem:[%s4688_s19 + $0x1a0] ss:$16 sps:$4 sm:$0xff]  }
  0x8b   : > { %2410 = vmatprep.subr.bf16.mxu1 %v3997_v4 }
  0x8c   : > { %1114 = vmatmul.mubr.bf16.vlgmr.msra.gmra.mxu0 %v3991_v2 }
  0x8d   : > { %1307 = vmatmul.mubr.bf16.vlgmr.msra.gmra.mxu1 %v3994_v3  ;;  %1123 = vmatprep.mubr.bf16.mxu0 %v3997_v4  ;;  %v1727_v3 = vld [vmem:[%s5376_s3 + $0x20] sm:$0xff] }
  0x8e   : > { %1316 = vmatprep.mubr.bf16.mxu1 %v3999_v5  ;;  %2411 = vmatpush1.bf16.msra.mxu1 %v4001_v6  ;;  %v4075_v4 = vld [vmem:[%s4688_s19 + $0x1c4] ss:$16 sps:$4 sm:$0xff]  }
  0x8f   : > { %2412 = vmatprep.subr.bf16.mxu1 %v3993_v49  ;;  %3743 = vmatpush3.msra.mxu0 %v1738_v10  ;;  %v4051_v49 = vld [vmem:[%s4688_s19 + $0x144] ss:$16 sps:$4 sm:$0xff]   ;;  %v4080_v10 = vld [vmem:[%s4688_s19 + $0x1c8] ss:$16 sps:$4 sm:$0xff]  }
  0x90   : > { %3744 = vmatprep.subr.mxu0 %v1737_v11 }
  0x91   : > { %3745 = vmatpush3.msra.mxu0 %v1737_v11  ;;  %v1723_v11 = vld [vmem:[%s5376_s3] sm:$0xff] }
  0x92   : > { %2413 = vmatpush1.bf16.msra.mxu1 %v3991_v2  ;;  %3746 = vmatprep.subr.mxu0 %v1736_v13  ;;  %v4074_v2 = vld [vmem:[%s4688_s19 + $0x1a8] ss:$16 sps:$4 sm:$0xff]  }
  0x93   : > { %2451 = vmatprep.subr.bf16.mxu1 %v3999_v5  ;;  %3747 = vmatpush3.msra.mxu0 %v1736_v13  ;;  %v4078_v5 = vld [vmem:[%s4688_s19 + $0x1cc] ss:$16 sps:$4 sm:$0xff]  }
  0x94   : > { %1124 = vmatmul.mubr.bf16.gmra.mxu0 %v4001_v6  ;;  %3748 = vmatprep.subr.mxu0 %v1735_v17  ;;  %v1726_v6 = vld [vmem:[%s5376_s3 + $0x18] sm:$0xff] }
  0x95   : > { %1317 = vmatmul.mubr.bf16.gmra.mxu1 %v4002_v7  ;;  %1133 = vmatprep.mubr.bf16.mxu0 %v4003_v8  ;;  %v1725_v7 = vld [vmem:[%s5376_s3 + $0x10] sm:$0xff]  ;;  %v1724_v8 = vld [vmem:[%s5376_s3 + $0x8] sm:$0xff] }
  0x96   : > { %1326 = vmatprep.mubr.bf16.mxu1 %v4005_v9  ;;  %3749 = vmatpush3.msra.mxu0 %v1735_v17  ;;  %v4077_v9 = vld [vmem:[%s4688_s19 + $0x1c0] ss:$16 sps:$4 sm:$0xff]   ;;  %v4084_v13 = vld [vmem:[%s4688_s19 + $0x1ec] ss:$16 sps:$4 sm:$0xff]  }
  0x97   : > { %3750 = vmatprep.subr.mxu0 %v1734_v18 }
  0x98   : > { %3751 = vmatpush3.msra.mxu0 %v1734_v18 }
  0x99   : > { %3752 = vmatprep.subr.mxu0 %v1733_v19 }
  0x9a   : > { %3753 = vmatpush3.msra.mxu0 %v1733_v19  ;;  %v429_v19 = vld [vmem:[%s5375_s2] sm:$0x3] }
  0x9b   : > { %3754 = vmatprep.subr.mxu0 %v1732_v24 }
  0x9c   : > { %1134 = vmatmul.mubr.bf16.gmra.mxu0 %v4007_v12  ;;  %v4081_v12 = vld [vmem:[%s4688_s19 + $0x1e4] ss:$16 sps:$4 sm:$0xff]  }
  0x9d   : > { %1327 = vmatmul.mubr.bf16.gmra.mxu1 %v4008_v14  ;;  %1143 = vmatprep.mubr.bf16.mxu0 %v4009_v15  ;;  %v4083_v14 = vld [vmem:[%s4688_s19 + $0x1e0] ss:$16 sps:$4 sm:$0xff]   ;;  %v4086_v15 = vld [vmem:[%s4688_s19 + $0x1e8] ss:$16 sps:$4 sm:$0xff]  }
  0x9e   : > { %1336 = vmatprep.mubr.bf16.mxu1 %v4011_v16  ;;  %3755 = vmatpush3.msra.mxu0 %v1732_v24  ;;  %v431_v16 = vlaneseq }
  0x9f   : > { %3756 = vmatprep.subr.mxu0 %v1731_v25 }
  0xa0   : > { %3757 = vmatpush3.msra.mxu0 %v1731_v25  ;;  %v4826_v17 = vshrl.u32 %v431_v16, 7 }
  0xa1   : > { %3758 = vmatprep.subr.mxu0 %v1730_v26 }
  0xa2   : > { %3759 = vmatpush3.msra.mxu0 %v1730_v26  ;;  %v437_v18 = vsub.s32 1, %v4826_v17 }
  0xa3   : > { %3760 = vmatprep.subr.mxu0 %v1729_v59 }
  0xa4   : > { %1144 = vmatmul.mubr.bf16.gmra.mxu0 %v4013_v20  ;;  %v4832_v20 = vrot.slane %v429_v19, %v437_v18 }
  0xa5   : > { %1337 = vmatmul.mubr.bf16.gmra.mxu1 %v4014_v21  ;;  %1153 = vmatprep.mubr.bf16.mxu0 %v4015_v22 }
  0xa6   : > { %1346 = vmatprep.mubr.bf16.mxu1 %v4017_v23  ;;  %3761 = vmatpush3.msra.mxu0 %v1729_v59 }
  0xa7   : > { %3762 = vmatprep.subr.mxu0 %v1728_v0 }
  0xa8   : > { %3763 = vmatpush3.msra.mxu0 %v1728_v0 }
  0xa9   : > { %3764 = vmatprep.subr.mxu0 %v1727_v3 }
  0xaa   : > { %3765 = vmatpush3.msra.mxu0 %v1727_v3 }
  0xab   : > { %3766 = vmatprep.subr.mxu0 %v1726_v6 }
  0xac   : > { %1154 = vmatmul.mubr.bf16.gmra.mxu0 %v4019_v27 }
  0xad   : > { %1347 = vmatmul.mubr.bf16.gmra.mxu1 %v4020_v28  ;;  %1163 = vmatprep.mubr.bf16.mxu0 %v4021_v29 }
  0xae   : > { %1356 = vmatprep.mubr.bf16.mxu1 %v4023_v30  ;;  %3767 = vmatpush3.msra.mxu0 %v1726_v6 }
  0xaf   : > { %3768 = vmatprep.subr.mxu0 %v1725_v7 }
  0xb0   : > { %3769 = vmatpush3.msra.mxu0 %v1725_v7 }
  0xb1   : > { %3770 = vmatprep.subr.mxu0 %v1724_v8 }
  0xb2   : > { %3771 = vmatpush3.msra.mxu0 %v1724_v8 }
  0xb3   : > { %3772 = vmatprep.subr.mxu0 %v1723_v11 }
  0xb4   : > { %1164 = vmatmul.mubr.bf16.gmra.mxu0 %v4025_v31 }
  0xb5   : > { %1357 = vmatmul.mubr.bf16.gmra.mxu1 %v4026_v32  ;;  %1173 = vmatprep.mubr.bf16.mxu0 %v4027_v33  ;;  %v433_v33 = vsub.s32 0, %v4826_v17 }
  0xb6   : > { %1366 = vmatprep.mubr.bf16.mxu1 %v4030_v34  ;;  %3773 = vmatpush3.msra.mxu0 %v1723_v11 }
  0xb7   : > { %2750 = vmatprep.subr.bf16.mxu0 %v4767_v45 }
  0xbc   : > { %1174 = vmatmul.mubr.bf16.gmra.mxu0 %v4029_v35 }
  0xbd   : > { %1367 = vmatmul.mubr.bf16.gmra.mxu1 %v4032_v36  ;;  %1183 = vmatprep.mubr.bf16.mxu0 %v4033_v37 }
  0xbe   : > { %1376 = vmatprep.mubr.bf16.mxu1 %v4036_v38 }
  0xc4   : > { %1184 = vmatmul.mubr.bf16.gmra.mxu0 %v4035_v39 }
  0xc5   : > { %1377 = vmatmul.mubr.bf16.gmra.mxu1 %v4038_v40  ;;  %1193 = vmatprep.mubr.bf16.mxu0 %v4758_v41 }
  0xc6   : > { %1386 = vmatprep.mubr.bf16.mxu1 %v4042_v42  ;;  %v4838_v42 = vrot.slane %v429_v19, %v433_v33 }
  0xcc   : > { %1194 = vmatmul.mubr.bf16.gmra.mxu0 %v4763_v43 }
  0xcd   : > { %1387 = vmatmul.mubr.bf16.gmra.mxu1 %v4044_v44  ;;  %1203 = vmatprep.mubr.bf16.mxu0 %v4767_v45 }
  0xce   : > { %1396 = vmatprep.mubr.bf16.mxu1 %v4048_v46 }
  0xd4   : > { %1204 = vmatmul.mubr.bf16.gmra.mxu0 %v4773_v47 }
  0xd5   : > { %1397 = vmatmul.mubr.bf16.gmra.mxu1 %v4050_v48  ;;  %1213 = vmatprep.mubr.bf16.mxu0 %v4051_v49 }
  0xd6   : > { %1406 = vmatprep.mubr.bf16.mxu1 %v4054_v50 }
  0xdc   : > { %1214 = vmatmul.mubr.bf16.gmra.mxu0 %v4053_v51 }
  0xdd   : > { %1407 = vmatmul.mubr.bf16.gmra.mxu1 %v4056_v52  ;;  %1223 = vmatprep.mubr.bf16.mxu0 %v4782_v53 }
  0xde   : > { %1416 = vmatprep.mubr.bf16.mxu1 %v4060_v54 }
  0xe4   : > { %1224 = vmatmul.mubr.bf16.gmra.mxu0 %v4059_v55 }
  0xe5   : > { %1417 = vmatmul.mubr.bf16.gmra.mxu1 %v4062_v56  ;;  %1233 = vmatprep.mubr.bf16.mxu0 %v4063_v57 }
  0xe6   : > { %1426 = vmatprep.mubr.bf16.mxu1 %v4066_v58 }
  0xec   : > { %1234 = vmatmul.mubr.bf16.gmra.mxu0 %v4065_v60 }
  0xed   : > { %1427 = vmatmul.mubr.bf16.gmra.mxu1 %v4068_v61  ;;  %1243 = vmatprep.mubr.bf16.mxu0 %v4069_v62 }
  0xee   : > { %1436 = vmatprep.mubr.bf16.mxu1 %v4072_v63 }
  0xf4   : > { %1244 = vmatmul.mubr.bf16.gmra.mxu0 %v4071_v1 }
  0xf5   : > { %1437 = vmatmul.mubr.bf16.gmra.mxu1 %v4074_v2  ;;  %1253 = vmatprep.mubr.bf16.mxu0 %v4075_v4 }
  0xf6   : > { %1446 = vmatprep.mubr.bf16.mxu1 %v4078_v5 }
  0xfc   : > { %1254 = vmatmul.mubr.bf16.gmra.mxu0 %v4077_v9 }
  0xfd   : > { %1447 = vmatmul.mubr.bf16.gmra.mxu1 %v4080_v10  ;;  %1263 = vmatprep.mubr.bf16.mxu0 %v4081_v12 }
  0xfe   : > { %1456 = vmatprep.mubr.bf16.mxu1 %v4084_v13 }
 0x104   : > { %1264 = vmatmul.mubr.bf16.gmra.mxu0 %v4083_v14 }
 0x105   : > { %1457 = vmatmul.mubr.bf16.gmra.mxu1 %v4086_v15 }
 0x14c   : > { %v1115_v21 = vpop.f32.mrf.mxu0 }
 0x14d   : > { %v1308_v22 = vpop.f32.mrf.mxu1  ;;  %v1116_v52 = vadd.f32 %v1115_v21, %v4838_v42 }
 0x14e   : > { %v1117_v23 = vpop.f32.mrf.mxu0 }
 0x14f   : > { %v1310_v24 = vpop.f32.mrf.mxu1  ;;  %v1118_v25 = vadd.f32 %v1117_v23, %v4832_v20  ;;  %v1309_v61 = vadd.f32 %v1308_v22, %v1116_v52 }
 0x150   : > { %v1119_v26 = vpop.f32.mrf.mxu0 }
 0x151   : > { %v1312_v27 = vpop.f32.mrf.mxu1  ;;  %v1311_v28 = vadd.f32 %v1310_v24, %v1118_v25  ;;  %v1120_v62 = vadd.f32 %v1119_v26, %v4838_v42 }
 0x152   : > { %v1121_v29 = vpop.f32.mrf.mxu0 }
 0x153   : > { %v1314_v30 = vpop.f32.mrf.mxu1  ;;  %v3623_v31 = vmul.f32 -1.442695, %v1311_v28  ;;  %v1122_v32 = vadd.f32 %v1121_v29, %v4832_v20  ;;  %v1313_v8 = vadd.f32 %v1312_v27, %v1120_v62 }
 0x154   : > { %v1125_v34 = vpop.f32.mrf.mxu0 }
 0x155   : > { %v1318_v35 = vpop.f32.mrf.mxu1  ;;  %4087 = vpow2.f32 %v3623_v31  ;;  %v1315_v36 = vadd.f32 %v1314_v30, %v1122_v32  ;;  %v1126_v9 = vadd.f32 %v1125_v34, %v4838_v42 }
 0x156   : > { %v1127_v37 = vpop.f32.mrf.mxu0 }
 0x157   : > { %v1320_v38 = vpop.f32.mrf.mxu1  ;;  %v3624_v39 = vmul.f32 -1.442695, %v1315_v36  ;;  %v1128_v40 = vadd.f32 %v1127_v37, %v4832_v20  ;;  %v1319_v19 = vadd.f32 %v1318_v35, %v1126_v9 }
 0x158   : > { %v1129_v44 = vpop.f32.mrf.mxu0 }
 0x159   : > { %v1322_v45 = vpop.f32.mrf.mxu1  ;;  %4089 = vpow2.f32 %v3624_v39  ;;  %v1321_v46 = vadd.f32 %v1320_v38, %v1128_v40  ;;  %v1130_v21 = vadd.f32 %v1129_v44, %v4838_v42 }
 0x15a   : > { %v1131_v48 = vpop.f32.mrf.mxu0 }
 0x15b   : > { %v1324_v49 = vpop.f32.mrf.mxu1  ;;  %v3625_v50 = vmul.f32 -1.442695, %v1321_v46  ;;  %v1132_v51 = vadd.f32 %v1131_v48, %v4832_v20  ;;  %v1323_v31 = vadd.f32 %v1322_v45, %v1130_v21 }
 0x15c   : > { %v1135_v54 = vpop.f32.mrf.mxu0 }
 0x15d   : > { %v1328_v55 = vpop.f32.mrf.mxu1  ;;  %4091 = vpow2.f32 %v3625_v50  ;;  %v1325_v56 = vadd.f32 %v1324_v49, %v1132_v51  ;;  %v1136_v32 = vadd.f32 %v1135_v54, %v4838_v42 }
 0x15e   : > { %v1137_v57 = vpop.f32.mrf.mxu0 }
 0x15f   : > { %v1330_v58 = vpop.f32.mrf.mxu1  ;;  %v3626_v59 = vmul.f32 -1.442695, %v1325_v56  ;;  %v1138_v60 = vadd.f32 %v1137_v57, %v4832_v20  ;;  %v1329_v48 = vadd.f32 %v1328_v55, %v1136_v32 }
 0x160   : > { %v1139_v63 = vpop.f32.mrf.mxu0 }
 0x161   : > { %v1332_v0 = vpop.f32.mrf.mxu1  ;;  %4093 = vpow2.f32 %v3626_v59  ;;  %v1331_v1 = vadd.f32 %v1330_v58, %v1138_v60  ;;  %v1140_v36 = vadd.f32 %v1139_v63, %v4838_v42 }
 0x162   : > { %v4088_v2 = vpop.eup %4087  ;;  %v1141_v3 = vpop.f32.mrf.mxu0  ;;  %4095 = vtanh.f32 %v1309_v61 }
 0x163   : > { %v1334_v4 = vpop.f32.mrf.mxu1  ;;  %v1595_v5 = vadd.f32 1.0, %v4088_v2  ;;  %v3627_v6 = vmul.f32 -1.442695, %v1331_v1  ;;  %v1142_v7 = vadd.f32 %v1141_v3, %v4832_v20  ;;  %v1333_v52 = vadd.f32 %v1332_v0, %v1140_v36 }
 0x164   : > { %v1145_v10 = vpop.f32.mrf.mxu0 }
 0x165   : > { %v4846_v11 = vpop.f32.mrf.mxu1  ;;  %4097 = vrcp.f32 %v1595_v5  ;;  %v1335_v12 = vadd.f32 %v1334_v4, %v1142_v7  ;;  %v1146_v62 = vadd.f32 %v1145_v10, %v4838_v42 }
 0x166   : > { %v4090_v13 = vpop.eup %4089  ;;  %4099 = vpow2.f32 %v3627_v6  ;;  %v1147_v14 = vpop.f32.mrf.mxu0 }
 0x167   : > { %v1340_v15 = vpop.f32.mrf.mxu1  ;;  %v1596_v16 = vadd.f32 1.0, %v4090_v13  ;;  %v3628_v18 = vmul.f32 -1.442695, %v1335_v12  ;;  %4101 = vtanh.f32 %v1313_v8  ;;  %v1148_v22 = vadd.f32 %v1147_v14, %v4832_v20 }
 0x168   : > { %v1149_v23 = vpop.f32.mrf.mxu0  ;;  %v1339_v10 = vadd.f32 %v4846_v11, %v1146_v62 }
 0x169   : > { %v4850_v24 = vpop.f32.mrf.mxu1  ;;  %4103 = vrcp.f32 %v1596_v16  ;;  %v1341_v26 = vadd.f32 %v1340_v15, %v1148_v22  ;;  %v1150_v13 = vadd.f32 %v1149_v23, %v4838_v42 }
 0x16a   : > { %v4092_v25 = vpop.eup %4091  ;;  %4105 = vpow2.f32 %v3628_v18  ;;  %v1151_v27 = vpop.f32.mrf.mxu0 }
 0x16b   : > { %v1344_v28 = vpop.f32.mrf.mxu1  ;;  %v1597_v29 = vadd.f32 1.0, %v4092_v25  ;;  %v1152_v30 = vadd.f32 %v1151_v27, %v4832_v20  ;;  %4107 = vtanh.f32 %v1319_v19  ;;  %v3629_v33 = vmul.f32 -1.442695, %v1341_v26 }
 0x16c   : > { %v4854_v34 = vpop.f32.mrf.mxu0  ;;  %v1343_v23 = vadd.f32 %v4850_v24, %v1150_v13 }
 0x16d   : > { %v4856_v35 = vpop.f32.mrf.mxu1  ;;  %4109 = vrcp.f32 %v1597_v29  ;;  %v1345_v37 = vadd.f32 %v1344_v28, %v1152_v30 }
 0x16e   : > { %v4094_v38 = vpop.eup %4093  ;;  %4111 = vpow2.f32 %v3629_v33  ;;  %v1157_v39 = vpop.f32.mrf.mxu0 }
 0x16f   : > { %v1350_v40 = vpop.f32.mrf.mxu1  ;;  %v1598_v44 = vadd.f32 1.0, %v4094_v38  ;;  %v3630_v46 = vmul.f32 -1.442695, %v1345_v37  ;;  %4113 = vtanh.f32 %v1323_v31  ;;  %v1158_v45 = vadd.f32 %v1157_v39, %v4832_v20  ;;  %v4096_v51 = vpop.eup %4095 }
 0x170   : > { %v4860_v49 = vpop.f32.mrf.mxu0  ;;  %v1156_v37 = vadd.f32 %v4854_v34, %v4838_v42 }
 0x171   : > { %v4862_v50 = vpop.f32.mrf.mxu1  ;;  %4115 = vrcp.f32 %v1598_v44  ;;  %v1351_v56 = vadd.f32 %v1350_v40, %v1158_v45 }
 0x172   : > { %v4098_v54 = vpop.eup %4097  ;;  %4117 = vpow2.f32 %v3630_v46  ;;  %v1161_v57 = vpop.f32.mrf.mxu0 }
 0x173   : > { %v1354_v58 = vpop.f32.mrf.mxu1  ;;  %v4100_v59 = vpop.eup %4099  ;;  %v1162_v60 = vadd.f32 %v1161_v57, %v4832_v20  ;;  %v1691_v61 = vmul.f32 %v4098_v54, %v4096_v51  ;;  %4119 = vtanh.f32 %v1329_v48  ;;  %v3631_v63 = vmul.f32 -1.442695, %v1351_v56 }
 0x174   : > { %v1599_v55 = vadd.f32 1.0, %v4100_v59  ;;  %v4866_v1 = vpop.f32.mrf.mxu0  ;;  %v4102_v3 = vpop.eup %4101  ;;  %4121 = vtanh.f32 %v1333_v52  ;;  %v1349_v54 = vadd.f32 %v4856_v35, %v1156_v37 }
 0x175   : > { %v4868_v2 = vpop.f32.mrf.mxu1  ;;  %v1355_v0 = vadd.f32 %v1354_v58, %v1162_v60  ;;  %3774 = vmatprep.mubr.f32.mxu0 %v1691_v61 }
 0x176   : > { %v4104_v4 = vpop.eup %4103  ;;  %4123 = vrcp.f32 %v1599_v55  ;;  %v1167_v5 = vpop.f32.mrf.mxu0 }
 0x177   : > { %v1360_v6 = vpop.f32.mrf.mxu1  ;;  %v4106_v7 = vpop.eup %4105  ;;  %4125 = vpow2.f32 %v3631_v63  ;;  %v3632_v8 = vmul.f32 -1.442695, %v1355_v0  ;;  %v1168_v9 = vadd.f32 %v1167_v5, %v4832_v20  ;;  %v1692_v16 = vmul.f32 %v4104_v4, %v4102_v3 }
 0x178   : > { %v1600_v12 = vadd.f32 1.0, %v4106_v7  ;;  %v4873_v14 = vpop.f32.mrf.mxu0  ;;  %v4108_v18 = vpop.eup %4107 }
 0x179   : > { %v4875_v15 = vpop.f32.mrf.mxu1  ;;  %4127 = vpow2.f32 %v3632_v8  ;;  %v1361_v19 = vadd.f32 %v1360_v6, %v1168_v9  ;;  %3775 = vmatmul.mubr.f32.vlgmr.msra.gmra.mxu0 %v1692_v16  ;;  %v1170_v8 = vadd.f32 %v4873_v14, %v4838_v42 }
 0x17a   : > { %v4110_v21 = vpop.eup %4109  ;;  %4129 = vrcp.f32 %v1600_v12  ;;  %v1171_v22 = vpop.f32.mrf.mxu0  ;;  %2751 = vmatpush1.bf16.msra.mxu0 %v4773_v47 }
 0x17b   : > { %v1364_v25 = vpop.f32.mrf.mxu1  ;;  %v4112_v26 = vpop.eup %4111  ;;  %v3633_v27 = vmul.f32 -1.442695, %v1361_v19  ;;  %v1172_v28 = vadd.f32 %v1171_v22, %v4832_v20  ;;  %4131 = vtanh.f32 %v1339_v10  ;;  %v1693_v30 = vmul.f32 %v4110_v21, %v4108_v18  ;;  %2752 = vmatprep.subr.bf16.mxu0 %v4758_v41 }
 0x17c   : > { %v1601_v11 = vadd.f32 1.0, %v4112_v26  ;;  %v4880_v29 = vpop.f32.mrf.mxu0  ;;  %v4114_v32 = vpop.eup %4113  ;;  %v1160_v41 = vadd.f32 %v4860_v49, %v4838_v42  ;;  %v1363_v14 = vadd.f32 %v4875_v15, %v1170_v8 }
 0x17d   : > { %v4882_v31 = vpop.f32.mrf.mxu1  ;;  %4133 = vpow2.f32 %v3633_v27  ;;  %v1365_v33 = vadd.f32 %v1364_v25, %v1172_v28  ;;  %3777 = vmatprep.mubr.f32.mxu0 %v1693_v30  ;;  %v1176_v27 = vadd.f32 %v4880_v29, %v4838_v42 }
 0x17e   : > { %v4116_v36 = vpop.eup %4115  ;;  %4135 = vrcp.f32 %v1601_v11  ;;  %v1177_v47 = vpop.f32.mrf.mxu0  ;;  %2753 = vmatpush1.bf16.msra.mxu0 %v4763_v43  ;;  %v1353_v60 = vadd.f32 %v4862_v50, %v1160_v41 }
 0x17f   : > { %v1370_v38 = vpop.f32.mrf.mxu1  ;;  %v4118_v39 = vpop.eup %4117  ;;  %v3634_v24 = vmul.f32 -1.442695, %v1365_v33  ;;  %v1178_v40 = vadd.f32 %v1177_v47, %v4832_v20  ;;  %4137 = vtanh.f32 %v1343_v23  ;;  %v1694_v48 = vmul.f32 %v4116_v36, %v4114_v32  ;;  %2835 = vmatprep.subr.bf16.mxu0 %v4782_v53 }
 0x180   : > { %v1602_v44 = vadd.f32 1.0, %v4118_v39  ;;  %v4891_v46 = vpop.f32.mrf.mxu0  ;;  %v4120_v34 = vpop.eup %4119  ;;  %v1166_v53 = vadd.f32 %v4866_v1, %v4838_v42 }
 0x181   : > { %v4893_v45 = vpop.f32.mrf.mxu1  ;;  %4139 = vpow2.f32 %v3634_v24  ;;  %v1371_v51 = vadd.f32 %v1370_v38, %v1178_v40  ;;  %v4122_v52 = vpop.eup %4121  ;;  %3778 = vmatmul.mubr.f32.gmra.mxu0 %v1694_v48  ;;  %v1180_v15 = vadd.f32 %v4891_v46, %v4838_v42  ;;  %v1369_v24 = vadd.f32 %v4882_v31, %v1176_v27 }
 0x182   : > { %4141 = vrcp.f32 %v1602_v44  ;;  %v1181_v43 = vpop.f32.mrf.mxu0  ;;  %v1359_v1 = vadd.f32 %v4868_v2, %v1166_v53 }
 0x183   : > { %v1374_v56 = vpop.f32.mrf.mxu1  ;;  %v4124_v57 = vpop.eup %4123  ;;  %v3635_v58 = vmul.f32 -1.442695, %v1371_v51  ;;  %v1182_v49 = vadd.f32 %v1181_v43, %v4832_v20  ;;  %v1373_v43 = vadd.f32 %v4893_v45, %v1180_v15 }
 0x184   : > { %v4126_v59 = vpop.eup %4125  ;;  %v4901_v61 = vpop.f32.mrf.mxu0  ;;  %v1695_v55 = vmul.f32 %v4124_v57, %v4120_v34 }
 0x185   : > { %v4903_v62 = vpop.f32.mrf.mxu1  ;;  %v1603_v63 = vadd.f32 1.0, %v4126_v59  ;;  %4143 = vpow2.f32 %v3635_v58  ;;  %v1375_v35 = vadd.f32 %v1374_v56, %v1182_v49  ;;  %v1186_v58 = vadd.f32 %v4901_v61, %v4838_v42 }
 0x186   : > { %v4128_v3 = vpop.eup %4127  ;;  %4145 = vtanh.f32 %v1349_v54  ;;  %3780 = vmatprep.mubr.f32.mxu0 %v1695_v55  ;;  %v1187_v0 = vpop.f32.mrf.mxu0 }
 0x187   : > { %v1380_v4 = vpop.f32.mrf.mxu1  ;;  %v4130_v5 = vpop.eup %4129  ;;  %4147 = vrcp.f32 %v1603_v63  ;;  %v1604_v6 = vadd.f32 1.0, %v4128_v3  ;;  %v3636_v50 = vmul.f32 -1.442695, %v1375_v35  ;;  %v1188_v7 = vadd.f32 %v1187_v0, %v4832_v20 }
 0x188   : > { %4149 = vtanh.f32 %v1353_v60  ;;  %v4909_v9 = vpop.f32.mrf.mxu0  ;;  %v1696_v12 = vmul.f32 %v4130_v5, %v4122_v52  ;;  %v4132_v13 = vpop.eup %4131  ;;  %v1379_v61 = vadd.f32 %v4903_v62, %v1186_v58 }
 0x189   : > { %v4911_v10 = vpop.f32.mrf.mxu1  ;;  %4151 = vrcp.f32 %v1604_v6  ;;  %v1381_v16 = vadd.f32 %v1380_v4, %v1188_v7  ;;  %v1190_v6 = vadd.f32 %v4909_v9, %v4838_v42 }
 0x18a   : > { %v4134_v18 = vpop.eup %4133  ;;  %4153 = vpow2.f32 %v3636_v50  ;;  %3781 = vmatmul.mubr.f32.gmra.mxu0 %v1696_v12  ;;  %v1191_v19 = vpop.f32.mrf.mxu0 }
 0x18b   : > { %v1384_v21 = vpop.f32.mrf.mxu1  ;;  %v4136_v22 = vpop.eup %4135  ;;  %v1605_v25 = vadd.f32 1.0, %v4134_v18  ;;  %v3637_v26 = vmul.f32 -1.442695, %v1381_v16  ;;  %v1192_v2 = vadd.f32 %v1191_v19, %v4832_v20  ;;  %4155 = vtanh.f32 %v1359_v1 }
 0x18c   : > { %v4917_v28 = vpop.f32.mrf.mxu0  ;;  %v1697_v11 = vmul.f32 %v4136_v22, %v4132_v13  ;;  %v4138_v30 = vpop.eup %4137 }
 0x18d   : > { %v4919_v23 = vpop.f32.mrf.mxu1  ;;  %4157 = vrcp.f32 %v1605_v25  ;;  %v1385_v32 = vadd.f32 %v1384_v21, %v1192_v2  ;;  %v1196_v62 = vadd.f32 %v4917_v28, %v4838_v42  ;;  %v1383_v25 = vadd.f32 %v4911_v10, %v1190_v6 }
 0x18e   : > { %v4140_v33 = vpop.eup %4139  ;;  %4159 = vpow2.f32 %v3637_v26  ;;  %3783 = vmatprep.mubr.f32.mxu0 %v1697_v11  ;;  %v1197_v36 = vpop.f32.mrf.mxu0 }
 0x18f   : > { %v1390_v37 = vpop.f32.mrf.mxu1  ;;  %v4142_v47 = vpop.eup %4141  ;;  %v1606_v38 = vadd.f32 1.0, %v4140_v33  ;;  %v3638_v39 = vmul.f32 -1.442695, %v1385_v32  ;;  %v1198_v29 = vadd.f32 %v1197_v36, %v4832_v20  ;;  %4161 = vtanh.f32 %v1363_v14 }
 0x190   : > { %v4925_v40 = vpop.f32.mrf.mxu0  ;;  %v1698_v44 = vmul.f32 %v4142_v47, %v4138_v30  ;;  %v1389_v36 = vadd.f32 %v4919_v23, %v1196_v62 }
 0x191   : > { %v4927_v41 = vpop.f32.mrf.mxu1  ;;  %4163 = vrcp.f32 %v1606_v38  ;;  %v1391_v48 = vadd.f32 %v1390_v37, %v1198_v29  ;;  %v1200_v38 = vadd.f32 %v4925_v40, %v4838_v42 }
 0x192   : > { %v4144_v34 = vpop.eup %4143  ;;  %4165 = vpow2.f32 %v3638_v39  ;;  %3784 = vmatmul.mubr.f32.gmra.mxu0 %v1698_v44  ;;  %v1201_v51 = vpop.f32.mrf.mxu0 }
 0x193   : > { %v1394_v52 = vpop.f32.mrf.mxu1  ;;  %v4146_v54 = vpop.eup %4145  ;;  %v1607_v46 = vadd.f32 1.0, %v4144_v34  ;;  %v3639_v56 = vmul.f32 -1.442695, %v1391_v48  ;;  %v1202_v57 = vadd.f32 %v1201_v51, %v4832_v20  ;;  %4167 = vtanh.f32 %v1369_v24 }
 0x194   : > { %v4148_v31 = vpop.eup %4147  ;;  %v4933_v49 = vpop.f32.mrf.mxu0 }
 0x195   : > { %v4935_v59 = vpop.f32.mrf.mxu1  ;;  %v4150_v60 = vpop.eup %4149  ;;  %4169 = vrcp.f32 %v1607_v46  ;;  %v1395_v53 = vadd.f32 %v1394_v52, %v1202_v57  ;;  %v1699_v55 = vmul.f32 %v4148_v31, %v4146_v54 }
 0x196   : > { %v4152_v63 = vpop.eup %4151  ;;  %4171 = vpow2.f32 %v3639_v56  ;;  %v1207_v35 = vpop.f32.mrf.mxu0  ;;  %v1206_v56 = vadd.f32 %v4933_v49, %v4838_v42 }
 0x197   : > { %v1400_v45 = vpop.f32.mrf.mxu1  ;;  %v4154_v3 = vpop.eup %4153  ;;  %4173 = vtanh.f32 %v1373_v43  ;;  %v3640_v0 = vmul.f32 -1.442695, %v1395_v53  ;;  %3786 = vmatprep.mubr.f32.mxu0 %v1699_v55  ;;  %v1208_v4 = vadd.f32 %v1207_v35, %v4832_v20  ;;  %v1700_v7 = vmul.f32 %v4152_v63, %v4150_v60 }
 0x198   : > { %v1608_v5 = vadd.f32 1.0, %v4154_v3  ;;  %v4941_v50 = vpop.f32.mrf.mxu0  ;;  %v4156_v8 = vpop.eup %4155  ;;  %v1393_v43 = vadd.f32 %v4927_v41, %v1200_v38  ;;  %v1399_v49 = vadd.f32 %v4935_v59, %v1206_v56 }
 0x199   : > { %v4943_v1 = vpop.f32.mrf.mxu1  ;;  %4175 = vpow2.f32 %v3640_v0  ;;  %v1401_v12 = vadd.f32 %v1400_v45, %v1208_v4  ;;  %3787 = vmatmul.mubr.f32.gmra.mxu0 %v1700_v7  ;;  %v1210_v0 = vadd.f32 %v4941_v50, %v4838_v42 }
 0x19a   : > { %v4158_v13 = vpop.eup %4157  ;;  %4177 = vrcp.f32 %v1608_v5  ;;  %v1211_v16 = vpop.f32.mrf.mxu0 }
 0x19b   : > { %v1404_v18 = vpop.f32.mrf.mxu1  ;;  %v4160_v19 = vpop.eup %4159  ;;  %v3641_v21 = vmul.f32 -1.442695, %v1401_v12  ;;  %v1212_v9 = vadd.f32 %v1211_v16, %v4832_v20  ;;  %4179 = vtanh.f32 %v1379_v61  ;;  %v1701_v2 = vmul.f32 %v4158_v13, %v4156_v8 }
 0x19c   : > { %v1609_v22 = vadd.f32 1.0, %v4160_v19  ;;  %v4949_v26 = vpop.f32.mrf.mxu0  ;;  %v4162_v27 = vpop.eup %4161  ;;  %v1403_v50 = vadd.f32 %v4943_v1, %v1210_v0 }
 0x19d   : > { %v4951_v14 = vpop.f32.mrf.mxu1  ;;  %4181 = vpow2.f32 %v3641_v21  ;;  %v1405_v11 = vadd.f32 %v1404_v18, %v1212_v9  ;;  %3789 = vmatprep.mubr.f32.mxu0 %v1701_v2  ;;  %v1216_v62 = vadd.f32 %v4949_v26, %v4838_v42 }
 0x19e   : > { %v4164_v30 = vpop.eup %4163  ;;  %4183 = vrcp.f32 %v1609_v22  ;;  %v1217_v32 = vpop.f32.mrf.mxu0 }
 0x19f   : > { %v1410_v28 = vpop.f32.mrf.mxu1  ;;  %v4166_v33 = vpop.eup %4165  ;;  %v3642_v37 = vmul.f32 -1.442695, %v1405_v11  ;;  %v1218_v47 = vadd.f32 %v1217_v32, %v4832_v20  ;;  %4185 = vtanh.f32 %v1383_v25  ;;  %v1702_v39 = vmul.f32 %v4164_v30, %v4162_v27 }
 0x1a0   : > { %v1610_v10 = vadd.f32 1.0, %v4166_v33  ;;  %v4957_v15 = vpop.f32.mrf.mxu0  ;;  %v4168_v24 = vpop.eup %4167  ;;  %v1409_v26 = vadd.f32 %v4951_v14, %v1216_v62 }
 0x1a1   : > { %v4959_v29 = vpop.f32.mrf.mxu1  ;;  %4187 = vpow2.f32 %v3642_v37  ;;  %v1411_v44 = vadd.f32 %v1410_v28, %v1218_v47  ;;  %3790 = vmatmul.mubr.f32.gmra.mxu0 %v1702_v39  ;;  %v1220_v37 = vadd.f32 %v4957_v15, %v4838_v42 }
 0x1a2   : > { %v4170_v48 = vpop.eup %4169  ;;  %4189 = vrcp.f32 %v1610_v10  ;;  %v1221_v23 = vpop.f32.mrf.mxu0 }
 0x1a3   : > { %v1414_v34 = vpop.f32.mrf.mxu1  ;;  %v4172_v51 = vpop.eup %4171  ;;  %4191 = vtanh.f32 %v1389_v36  ;;  %v3643_v52 = vmul.f32 -1.442695, %v1411_v44  ;;  %v1222_v54 = vadd.f32 %v1221_v23, %v4832_v20  ;;  %v1703_v31 = vmul.f32 %v4170_v48, %v4168_v24 }
 0x1a4   : > { %v4174_v46 = vpop.eup %4173  ;;  %v1611_v40 = vadd.f32 1.0, %v4172_v51  ;;  %v4965_v57 = vpop.f32.mrf.mxu0  ;;  %v1413_v15 = vadd.f32 %v4959_v29, %v1220_v37 }
 0x1a5   : > { %v4967_v58 = vpop.f32.mrf.mxu1  ;;  %4193 = vpow2.f32 %v3643_v52  ;;  %v1415_v60 = vadd.f32 %v1414_v34, %v1222_v54  ;;  %3792 = vmatprep.mubr.f32.mxu0 %v1703_v31  ;;  %v1226_v52 = vadd.f32 %v4965_v57, %v4838_v42 }
 0x1a6   : > { %v4176_v53 = vpop.eup %4175  ;;  %4195 = vrcp.f32 %v1611_v40  ;;  %v1227_v55 = vpop.f32.mrf.mxu0 }
 0x1a7   : > { %v1420_v63 = vpop.f32.mrf.mxu1  ;;  %v4178_v35 = vpop.eup %4177  ;;  %v1612_v45 = vadd.f32 1.0, %v4176_v53  ;;  %v3644_v3 = vmul.f32 -1.442695, %v1415_v60  ;;  %v1228_v41 = vadd.f32 %v1227_v55, %v4832_v20  ;;  %4197 = vtanh.f32 %v1393_v43 }
 0x1a8   : > { %v4973_v4 = vpop.f32.mrf.mxu0  ;;  %v1704_v5 = vmul.f32 %v4178_v35, %v4174_v46  ;;  %v4180_v6 = vpop.eup %4179  ;;  %v1419_v57 = vadd.f32 %v4967_v58, %v1226_v52 }
 0x1a9   : > { %v4975_v61 = vpop.f32.mrf.mxu1  ;;  %4199 = vrcp.f32 %v1612_v45  ;;  %v1421_v7 = vadd.f32 %v1420_v63, %v1228_v41 }
 0x1aa   : > { %v4182_v8 = vpop.eup %4181  ;;  %4201 = vpow2.f32 %v3644_v3  ;;  %3793 = vmatmul.mubr.f32.gmra.mxu0 %v1704_v5  ;;  %v1231_v12 = vpop.f32.mrf.mxu0  ;;  %v1230_v3 = vadd.f32 %v4973_v4, %v4838_v42 }
 0x1ab   : > { %v1424_v13 = vpop.f32.mrf.mxu1  ;;  %v4184_v16 = vpop.eup %4183  ;;  %v1613_v18 = vadd.f32 1.0, %v4182_v8  ;;  %v3645_v19 = vmul.f32 -1.442695, %v1421_v7  ;;  %v1232_v59 = vadd.f32 %v1231_v12, %v4832_v20  ;;  %4203 = vtanh.f32 %v1399_v49 }
 0x1ac   : > { %v1705_v21 = vmul.f32 %v4184_v16, %v4180_v6  ;;  %v4981_v9 = vpop.f32.mrf.mxu0  ;;  %v4186_v25 = vpop.eup %4185  ;;  %v1423_v4 = vadd.f32 %v4975_v61, %v1230_v3 }
 0x1ad   : > { %v4983_v22 = vpop.f32.mrf.mxu1  ;;  %4205 = vrcp.f32 %v1613_v18  ;;  %v1425_v2 = vadd.f32 %v1424_v13, %v1232_v59 }
 0x1ae   : > { %v4188_v27 = vpop.eup %4187  ;;  %4207 = vpow2.f32 %v3645_v19  ;;  %3795 = vmatprep.mubr.f32.mxu0 %v1705_v21  ;;  %v1237_v11 = vpop.f32.mrf.mxu0  ;;  %v1236_v19 = vadd.f32 %v4981_v9, %v4838_v42 }
 0x1af   : > { %v1430_v30 = vpop.f32.mrf.mxu1  ;;  %v4190_v32 = vpop.eup %4189  ;;  %v1614_v28 = vadd.f32 1.0, %v4188_v27  ;;  %v3646_v33 = vmul.f32 -1.442695, %v1425_v2  ;;  %v1238_v1 = vadd.f32 %v1237_v11, %v4832_v20  ;;  %4209 = vtanh.f32 %v1403_v50 }
 0x1b0   : > { %v4192_v36 = vpop.eup %4191  ;;  %v1706_v47 = vmul.f32 %v4190_v32, %v4186_v25  ;;  %v4989_v10 = vpop.f32.mrf.mxu0 }
 0x1b1   : > { %v4991_v38 = vpop.f32.mrf.mxu1  ;;  %4211 = vrcp.f32 %v1614_v28  ;;  %v1431_v39 = vadd.f32 %v1430_v30, %v1238_v1  ;;  %v1240_v61 = vadd.f32 %v4989_v10, %v4838_v42 }
 0x1b2   : > { %v4194_v24 = vpop.eup %4193  ;;  %4213 = vpow2.f32 %v3646_v33  ;;  %3796 = vmatmul.mubr.f32.gmra.mxu0 %v1706_v47  ;;  %v1241_v44 = vpop.f32.mrf.mxu0  ;;  %v1429_v33 = vadd.f32 %v4983_v22, %v1236_v19 }
 0x1b3   : > { %v1434_v48 = vpop.f32.mrf.mxu1  ;;  %v4196_v23 = vpop.eup %4195  ;;  %v1615_v34 = vadd.f32 1.0, %v4194_v24  ;;  %v3647_v51 = vmul.f32 -1.442695, %v1431_v39  ;;  %v1242_v14 = vadd.f32 %v1241_v44, %v4832_v20  ;;  %4215 = vtanh.f32 %v1409_v26 }
 0x1b4   : > { %v1707_v54 = vmul.f32 %v4196_v23, %v4192_v36  ;;  %v1245_v46 = vpop.f32.mrf.mxu0  ;;  %v4198_v43 = vpop.eup %4197  ;;  %v1433_v23 = vadd.f32 %v4991_v38, %v1240_v61 }
 0x1b5   : > { %v4997_v40 = vpop.f32.mrf.mxu1  ;;  %4217 = vrcp.f32 %v1615_v34  ;;  %v1435_v56 = vadd.f32 %v1434_v48, %v1242_v14  ;;  %v1246_v1 = vadd.f32 %v1245_v46, %v4838_v42 }
 0x1b6   : > { %v4200_v31 = vpop.eup %4199  ;;  %3798 = vmatprep.mubr.f32.mxu0 %v1707_v54  ;;  %4219 = vpow2.f32 %v3647_v51  ;;  %v1247_v60 = vpop.f32.mrf.mxu0 }
 0x1b7   : > { %v1440_v53 = vpop.f32.mrf.mxu1  ;;  %v4202_v55 = vpop.eup %4201  ;;  %v1708_v63 = vmul.f32 %v4200_v31, %v4198_v43  ;;  %v3648_v35 = vmul.f32 -1.442695, %v1435_v56  ;;  %v1248_v29 = vadd.f32 %v1247_v60, %v4832_v20  ;;  %4221 = vtanh.f32 %v1413_v15 }
 0x1b8   : > { %v1616_v45 = vadd.f32 1.0, %v4202_v55  ;;  %v5003_v41 = vpop.f32.mrf.mxu0  ;;  %v4204_v0 = vpop.eup %4203  ;;  %v1439_v14 = vadd.f32 %v4997_v40, %v1246_v1 }
 0x1b9   : > { %v5005_v49 = vpop.f32.mrf.mxu1  ;;  %3799 = vmatmul.mubr.f32.gmra.mxu0 %v1708_v63  ;;  %4223 = vpow2.f32 %v3648_v35  ;;  %v1441_v5 = vadd.f32 %v1440_v53, %v1248_v29  ;;  %v1250_v56 = vadd.f32 %v5003_v41, %v4838_v42 }
 0x1ba   : > { %v4206_v6 = vpop.eup %4205  ;;  %4225 = vrcp.f32 %v1616_v45  ;;  %v1251_v7 = vpop.f32.mrf.mxu0 }
 0x1bb   : > { %v1444_v8 = vpop.f32.mrf.mxu1  ;;  %v4208_v12 = vpop.eup %4207  ;;  %v1709_v13 = vmul.f32 %v4206_v6, %v4204_v0  ;;  %v3649_v16 = vmul.f32 -1.442695, %v1441_v5  ;;  %v1252_v58 = vadd.f32 %v1251_v7, %v4832_v20  ;;  %4227 = vtanh.f32 %v1419_v57 }
 0x1bc   : > { %v1617_v18 = vadd.f32 1.0, %v4208_v12  ;;  %v5011_v59 = vpop.f32.mrf.mxu0  ;;  %v4210_v62 = vpop.eup %4209  ;;  %v1443_v0 = vadd.f32 %v5005_v49, %v1250_v56 }
 0x1bd   : > { %v5013_v50 = vpop.f32.mrf.mxu1  ;;  %3801 = vmatprep.mubr.f32.mxu0 %v1709_v13  ;;  %4229 = vpow2.f32 %v3649_v16  ;;  %v1445_v21 = vadd.f32 %v1444_v8, %v1252_v58  ;;  %v1256_v8 = vadd.f32 %v5011_v59, %v4838_v42 }
 0x1be   : > { %v4212_v25 = vpop.eup %4211  ;;  %4231 = vrcp.f32 %v1617_v18  ;;  %v1257_v2 = vpop.f32.mrf.mxu0 }
 0x1bf   : > { %v1450_v27 = vpop.f32.mrf.mxu1  ;;  %v4214_v11 = vpop.eup %4213  ;;  %v1710_v30 = vmul.f32 %v4212_v25, %v4210_v62  ;;  %v3650_v32 = vmul.f32 -1.442695, %v1445_v21  ;;  %v1258_v9 = vadd.f32 %v1257_v2, %v4832_v20  ;;  %4233 = vtanh.f32 %v1423_v4 }
 0x1c0   : > { %v1618_v28 = vadd.f32 1.0, %v4214_v11  ;;  %v5020_v36 = vpop.f32.mrf.mxu0  ;;  %v4216_v37 = vpop.eup %4215  ;;  %v1449_v62 = vadd.f32 %v5013_v50, %v1256_v8 }
 0x1c1   : > { %v5022_v26 = vpop.f32.mrf.mxu1  ;;  %3802 = vmatmul.mubr.f32.gmra.mxu0 %v1710_v30  ;;  %4235 = vpow2.f32 %v3650_v32  ;;  %v1451_v47 = vadd.f32 %v1450_v27, %v1258_v9  ;;  %v1260_v59 = vadd.f32 %v5020_v36, %v4838_v42 }
 0x1c2   : > { %v4218_v39 = vpop.eup %4217  ;;  %4237 = vrcp.f32 %v1618_v28  ;;  %v1261_v10 = vpop.f32.mrf.mxu0 }
 0x1c3   : > { %v1454_v24 = vpop.f32.mrf.mxu1  ;;  %v4220_v44 = vpop.eup %4219  ;;  %v1711_v48 = vmul.f32 %v4218_v39, %v4216_v37  ;;  %v3651_v34 = vmul.f32 -1.442695, %v1451_v47  ;;  %v1262_v22 = vadd.f32 %v1261_v10, %v4832_v20  ;;  %4239 = vtanh.f32 %v1429_v33 }
 0x1c4   : > { %v1619_v51 = vadd.f32 1.0, %v4220_v44  ;;  %v1265_v15 = vpop.f32.mrf.mxu0  ;;  %v4222_v54 = vpop.eup %4221  ;;  %v1453_v61 = vadd.f32 %v5022_v26, %v1260_v59 }
 0x1c5   : > { %v5027_v52 = vpop.f32.mrf.mxu1  ;;  %3804 = vmatprep.mubr.f32.mxu0 %v1711_v48  ;;  %4241 = vpow2.f32 %v3651_v34  ;;  %v1455_v46 = vadd.f32 %v1454_v24, %v1262_v22  ;;  %v1266_v32 = vadd.f32 %v1265_v15, %v4838_v42 }
 0x1c6   : > { %v4224_v43 = vpop.eup %4223  ;;  %4243 = vrcp.f32 %v1619_v51  ;;  %v1267_v38 = vpop.f32.mrf.mxu0 }
 0x1c7   : > { %v1460_v31 = vpop.f32.mrf.mxu1  ;;  %v4226_v60 = vpop.eup %4225  ;;  %4245 = vtanh.f32 %v1433_v23  ;;  %v1620_v53 = vadd.f32 1.0, %v4224_v43  ;;  %v3652_v55 = vmul.f32 -1.442695, %v1455_v46  ;;  %v1268_v40 = vadd.f32 %v1267_v38, %v4832_v20 }
 0x1c8   : > { %v1712_v63 = vmul.f32 %v4226_v60, %v4222_v54  ;;  %4247 = vtanh.f32 %v1439_v14  ;;  %v1269_v35 = vpop.f32.mrf.mxu0  ;;  %v4228_v45 = vpop.eup %4227  ;;  %v1459_v37 = vadd.f32 %v5027_v52, %v1266_v32 }
 0x1c9   : > { %v1462_v29 = vpop.f32.mrf.mxu1  ;;  %4249 = vrcp.f32 %v1620_v53  ;;  %v1461_v57 = vadd.f32 %v1460_v31, %v1268_v40  ;;  %v1270_v47 = vadd.f32 %v1269_v35, %v4838_v42  ;;  %v5046_v40 = vld [vmem:[%s5377_s4] ss:$0 sm:$0xff] }
 0x1ca   : > { %v4230_v3 = vpop.eup %4229  ;;  %3805 = vmatmul.mubr.f32.gmra.mxu0 %v1712_v63  ;;  %4251 = vpow2.f32 %v3652_v55  ;;  %v1271_v41 = vpop.f32.mrf.mxu0 }
 0x1cb   : > { %v1464_v5 = vpop.f32.mrf.mxu1  ;;  %v4232_v6 = vpop.eup %4231  ;;  %v1621_v7 = vadd.f32 1.0, %v4230_v3  ;;  %v3653_v12 = vmul.f32 -1.442695, %v1461_v57  ;;  %v1272_v13 = vadd.f32 %v1271_v41, %v4832_v20  ;;  %v1463_v48 = vadd.f32 %v1462_v29, %v1270_v47 }
 0x1cc   : > { %v1713_v16 = vmul.f32 %v4232_v6, %v4228_v45  ;;  %v4234_v58 = vpop.eup %4233 }
 0x1cd   : > { %4253 = vrcp.f32 %v1621_v7  ;;  %v1465_v18 = vadd.f32 %v1464_v5, %v1272_v13 }
 0x1ce   : > { %v4236_v4 = vpop.eup %4235  ;;  %3807 = vmatprep.mubr.f32.mxu0 %v1713_v16  ;;  %4255 = vpow2.f32 %v3653_v12 }
 0x1cf   : > { %v4238_v19 = vpop.eup %4237  ;;  %4257 = vtanh.f32 %v1443_v0  ;;  %v1622_v49 = vadd.f32 1.0, %v4236_v4  ;;  %v3654_v21 = vmul.f32 -1.442695, %v1465_v18 }
 0x1d0   : > { %v1714_v25 = vmul.f32 %v4238_v19, %v4234_v58  ;;  %v4240_v2 = vpop.eup %4239 }
 0x1d1   : > { %4259 = vrcp.f32 %v1622_v49 }
 0x1d2   : > { %v4242_v20 = vpop.eup %4241  ;;  %3808 = vmatmul.mubr.f32.gmra.mxu0 %v1714_v25  ;;  %4261 = vpow2.f32 %v3654_v21 }
 0x1d3   : > { %v4244_v27 = vpop.eup %4243  ;;  %4263 = vtanh.f32 %v1449_v62  ;;  %v1623_v11 = vadd.f32 1.0, %v4242_v20 }
 0x1d4   : > { %v4246_v30 = vpop.eup %4245  ;;  %v1715_v9 = vmul.f32 %v4244_v27, %v4240_v2 }
 0x1d5   : > { %v4248_v50 = vpop.eup %4247  ;;  %4265 = vrcp.f32 %v1623_v11 }
 0x1d6   : > { %v4250_v28 = vpop.eup %4249  ;;  %3810 = vmatprep.mubr.f32.mxu0 %v1715_v9  ;;  %4267 = vtanh.f32 %v1453_v61 }
 0x1d7   : > { %v4252_v33 = vpop.eup %4251  ;;  %v1716_v1 = vmul.f32 %v4250_v28, %v4246_v30 }
 0x1d8   : > { %v1624_v36 = vadd.f32 1.0, %v4252_v33 }
 0x1d9   : > { %3811 = vmatmul.mubr.f32.gmra.mxu0 %v1716_v1 }
 0x1da   : > { %v4254_v39 = vpop.eup %4253  ;;  %4269 = vrcp.f32 %v1624_v36 }
 0x1db   : > { %v4256_v10 = vpop.eup %4255  ;;  %v1717_v26 = vmul.f32 %v4254_v39, %v4248_v50  ;;  %4271 = vtanh.f32 %v1459_v37 }
 0x1dc   : > { %v4258_v24 = vpop.eup %4257  ;;  %v1625_v44 = vadd.f32 1.0, %v4256_v10 }
 0x1dd   : > { %3813 = vmatprep.mubr.f32.mxu0 %v1717_v26 }
 0x1de   : > { %v4260_v23 = vpop.eup %4259  ;;  %4273 = vrcp.f32 %v1625_v44 }
 0x1df   : > { %v4262_v34 = vpop.eup %4261  ;;  %v1718_v22 = vmul.f32 %v4260_v23, %v4258_v24  ;;  %4275 = vtanh.f32 %v1463_v48 }
 0x1e0   : > { %v4264_v51 = vpop.eup %4263  ;;  %v1626_v14 = vadd.f32 1.0, %v4262_v34 }
 0x1e1   : > { %3814 = vmatmul.mubr.f32.gmra.mxu0 %v1718_v22 }
 0x1e2   : > { %v4266_v15 = vpop.eup %4265  ;;  %4277 = vrcp.f32 %v1626_v14 }
 0x1e3   : > { %v1719_v42 = vmul.f32 %v4266_v15, %v4264_v51  ;;  %v4268_v52 = vpop.eup %4267 }
 0x1e5   : > { %3816 = vmatprep.mubr.f32.mxu0 %v1719_v42 }
 0x1e7   : > { %v4270_v54 = vpop.eup %4269 }
 0x1e8   : > { %v1720_v46 = vmul.f32 %v4270_v54, %v4268_v52  ;;  %v4272_v43 = vpop.eup %4271 }
 0x1ea   : > { %3817 = vmatmul.mubr.f32.gmra.mxu0 %v1720_v46 }
 0x1eb   : > { %v4274_v56 = vpop.eup %4273 }
 0x1ec   : > { %v1721_v38 = vmul.f32 %v4274_v56, %v4272_v43  ;;  %v4276_v31 = vpop.eup %4275 }
 0x1ee   : > { %3819 = vmatprep.mubr.f32.mxu0 %v1721_v38 }
 0x1ef   : > { %v4278_v60 = vpop.eup %4277 }
 0x1f0   : > { %v1722_v53 = vmul.f32 %v4278_v60, %v4276_v31 }
 0x1f2   : > { %3820 = vmatmul.mubr.f32.gmra.mxu0 %v1722_v53 }
 0x239   : > { %v3776_v55 = vpop.f32.mrf.mxu0 }
 0x23a   : > { %v1818_v29 = vadd.f32 %v3776_v55, %v5046_v40 }
 0x23b   : > { %v1812_v63 = vpop.f32.mrf.mxu0 }
 0x23c   : > { %v1813_v35 = vadd.f32 %v5046_v40, %v1812_v63 }
 0x23e   : > { %1971 = vxpose.xlu0.b32.start [1/4] (short) (narrow) %v1813_v35, 8 }
 0x241   : > { %v3779_v45 = vpop.f32.mrf.mxu0 }
 0x242   : > { %1972 = vxpose.xlu0.b32.cont [2/4] (short) (narrow) %v1818_v29, 8  ;;  %v1828_v0 = vadd.f32 %v3779_v45, %v5046_v40 }
 0x243   : > { %v1822_v57 = vpop.f32.mrf.mxu0 }
 0x244   : > { %v1823_v3 = vadd.f32 %v5046_v40, %v1822_v57 }
 0x246   : > { %1973 = vxpose.xlu0.b32.cont [3/4] (short) (narrow) %v1823_v3, 8 }
 0x24a   : > { %v3782_v41 = vpop.f32.mrf.mxu0  ;;  %1974 = vxpose.xlu0.b32.end [4/4] (short) (narrow) %v1828_v0, 8 }
 0x24b   : > { %v1838_v7 = vadd.f32 %v3782_v41, %v5046_v40 }
 0x24c   : > { %v1832_v5 = vpop.f32.mrf.mxu0 }
 0x24d   : > { %v1833_v6 = vadd.f32 %v5046_v40, %v1832_v5 }
 0x24f   : > { %2003 = vxpose.xlu1.b32.start [1/4] (short) (narrow) %v1833_v6, 8 }
 0x252   : > { %v3785_v8 = vpop.f32.mrf.mxu0 }
 0x253   : > { %2004 = vxpose.xlu1.b32.cont [2/4] (short) (narrow) %v1838_v7, 8  ;;  %v1848_v16 = vadd.f32 %v3785_v8, %v5046_v40 }
 0x254   : > { %v1842_v12 = vpop.f32.mrf.mxu0 }
 0x255   : > { %v1843_v13 = vadd.f32 %v5046_v40, %v1842_v12 }
 0x257   : > { %2005 = vxpose.xlu1.b32.cont [3/4] (short) (narrow) %v1843_v13, 8 }
 0x259   : > { %v3788_v58 = vpop.f32.mrf.mxu0 }
 0x25a   : > { %v1858_v19 = vadd.f32 %v3788_v58, %v5046_v40 }
 0x25b   : > { %2006 = vxpose.xlu1.b32.end [4/4] (short) (narrow) %v1848_v16, 8  ;;  %v1852_v18 = vpop.f32.mrf.mxu0 }
 0x25c   : > { %v1853_v4 = vadd.f32 %v5046_v40, %v1852_v18 }
 0x25e   : > { %2035 = vxpose.xlu0.b32.start [1/4] (short) (narrow) %v1853_v4, 8 }
 0x261   : > { %v3791_v49 = vpop.f32.mrf.mxu0 }
 0x262   : > { %2036 = vxpose.xlu0.b32.cont [2/4] (short) (narrow) %v1858_v19, 8  ;;  %v1868_v25 = vadd.f32 %v3791_v49, %v5046_v40 }
 0x263   : > { %v1862_v62 = vpop.f32.mrf.mxu0 }
 0x264   : > { %v1863_v21 = vadd.f32 %v5046_v40, %v1862_v62 }
 0x266   : > { %2037 = vxpose.xlu0.b32.cont [3/4] (short) (narrow) %v1863_v21, 8 }
 0x26a   : > { %v3794_v59 = vpop.f32.mrf.mxu0  ;;  %2038 = vxpose.xlu0.b32.end [4/4] (short) (narrow) %v1868_v25, 8 }
 0x26b   : > { %v1878_v27 = vadd.f32 %v3794_v59, %v5046_v40 }
 0x26c   : > { %v1872_v2 = vpop.f32.mrf.mxu0 }
 0x26d   : > { %v1873_v20 = vadd.f32 %v5046_v40, %v1872_v2 }
 0x26f   : > { %2067 = vxpose.xlu0.b32.start [1/4] (short) (narrow) %v1873_v20, 8 }
 0x272   : > { %v3797_v11 = vpop.f32.mrf.mxu0 }
 0x273   : > { %2068 = vxpose.xlu0.b32.cont [2/4] (short) (narrow) %v1878_v27, 8  ;;  %v1888_v32 = vadd.f32 %v3797_v11, %v5046_v40 }
 0x274   : > { %v1882_v30 = vpop.f32.mrf.mxu0 }
 0x275   : > { %v1883_v61 = vadd.f32 %v5046_v40, %v1882_v30 }
 0x277   : > { %2069 = vxpose.xlu0.b32.cont [3/4] (short) (narrow) %v1883_v61, 8 }
 0x279   : > { %v3800_v9 = vpop.f32.mrf.mxu0 }
 0x27a   : > { %v1898_v33 = vadd.f32 %v3800_v9, %v5046_v40 }
 0x27b   : > { %2070 = vxpose.xlu0.b32.end [4/4] (short) (narrow) %v1888_v32, 8  ;;  %v1892_v50 = vpop.f32.mrf.mxu0 }
 0x27c   : > { %v1893_v28 = vadd.f32 %v5046_v40, %v1892_v50 }
 0x27e   : > { %2099 = vxpose.xlu1.b32.start [1/4] (short) (narrow) %v1893_v28, 8  ;;  %v4525_v28 = vmov 0  }
 0x27f   : > { %2430 = vmatprep.mubr.bf16.mxu1 %v4525_v28  ;;  %2770 = vmatprep.mubr.bf16.mxu0 %v4525_v28 }
 0x281   : > { %v3803_v1 = vpop.f32.mrf.mxu0 }
 0x282   : > { %2100 = vxpose.xlu1.b32.cont [2/4] (short) (narrow) %v1898_v33, 8  ;;  %v1908_v47 = vadd.f32 %v3803_v1, %v5046_v40 }
 0x283   : > { %v1902_v36 = vpop.f32.mrf.mxu0 }
 0x284   : > { %v1903_v37 = vadd.f32 %v5046_v40, %v1902_v36 }
 0x286   : > { %2101 = vxpose.xlu1.b32.cont [3/4] (short) (narrow) %v1903_v37, 8 }
 0x28a   : > { %v3806_v39 = vpop.f32.mrf.mxu0  ;;  %2102 = vxpose.xlu1.b32.end [4/4] (short) (narrow) %v1908_v47, 8 }
 0x28b   : > { %v1918_v24 = vadd.f32 %v3806_v39, %v5046_v40 }
 0x28c   : > { %v1912_v10 = vpop.f32.mrf.mxu0 }
 0x28d   : > { %v1913_v26 = vadd.f32 %v5046_v40, %v1912_v10 }
 0x28f   : > { %2131 = vxpose.xlu0.b32.start [1/4] (short) (narrow) %v1913_v26, 8 }
 0x292   : > { %v3809_v44 = vpop.f32.mrf.mxu0 }
 0x293   : > { %2132 = vxpose.xlu0.b32.cont [2/4] (short) (narrow) %v1918_v24, 8  ;;  %v1928_v34 = vadd.f32 %v3809_v44, %v5046_v40 }
 0x294   : > { %v1922_v48 = vpop.f32.mrf.mxu0 }
 0x295   : > { %v1923_v23 = vadd.f32 %v5046_v40, %v1922_v48 }
 0x297   : > { %2133 = vxpose.xlu0.b32.cont [3/4] (short) (narrow) %v1923_v23, 8 }
 0x299   : > { %v3812_v54 = vpop.f32.mrf.mxu0 }
 0x29a   : > { %v1938_v38 = vadd.f32 %v3812_v54, %v5046_v40 }
 0x29b   : > { %2134 = vxpose.xlu0.b32.end [4/4] (short) (narrow) %v1928_v34, 8  ;;  %v1932_v46 = vpop.f32.mrf.mxu0 }
 0x29c   : > { %v1933_v43 = vadd.f32 %v5046_v40, %v1932_v46 }
 0x2a1   : > { %v3815_v56 = vpop.f32.mrf.mxu0 }
 0x2a2   : > { %v1948_v53 = vadd.f32 %v3815_v56, %v5046_v40 }
 0x2a3   : > { %v1942_v31 = vpop.f32.mrf.mxu0 }
 0x2a4   : > { %v1943_v60 = vadd.f32 %v5046_v40, %v1942_v31 }
 0x2aa   : > { %v3818_v55 = vpop.f32.mrf.mxu0 }
 0x2ab   : > { %v1958_v45 = vadd.f32 %v3818_v55, %v5046_v40 }
 0x2ac   : > { %v1952_v63 = vpop.f32.mrf.mxu0 }
 0x2ad   : > { %v1953_v35 = vadd.f32 %v5046_v40, %v1952_v63 }
 0x2b2   : > { %v3821_v29 = vpop.f32.mrf.mxu0 }
 0x2b3   : > { %v1968_v0 = vadd.f32 %v3821_v29, %v5046_v40 }
 0x2b4   : > { %v1962_v57 = vpop.f32.mrf.mxu0 }
 0x2b5   : > { %v1963_v3 = vadd.f32 %v5046_v40, %v1962_v57 }
 0x2ba   : > { %v1987_v22 = vpop.trf.xlu0 }
 0x2bb   : > { %v2228_v51 = vsel %vm2227_vm0, %v1987_v22, -inf }
 0x2bc   : > { %2229 = vmax.xlane.f32.xlu1 %v2228_v51 }
 0x2cb   : > { %v2019_v14 = vpop.trf.xlu1 }
 0x2cc   : > { %v2231_v15 = vsel %vm2227_vm0, %v2019_v14, -inf }
 0x2cd   : > { %2232 = vmax.xlane.f32.xlu0 %v2231_v15 }
 0x2da   : > { %v2051_v42 = vpop.trf.xlu0 }
 0x2db   : > { %v2234_v52 = vsel %vm2227_vm0, %v2051_v42, -inf }
 0x2dc   : > { %2235 = vmax.xlane.f32.xlu0 %v2234_v52 }
 0x2eb   : > { %v2083_v41 = vpop.trf.xlu0 }
 0x2ec   : > { %v2237_v5 = vsel %vm2227_vm0, %v2083_v41, -inf }
 0x2ef   : > { %2163 = vxpose.xlu1.b32.start [1/4] (short) (narrow) %v1933_v43, 8 }
 0x2f3   : > { %2164 = vxpose.xlu1.b32.cont [2/4] (short) (narrow) %v1938_v38, 8 }
 0x2f7   : > { %2165 = vxpose.xlu1.b32.cont [3/4] (short) (narrow) %v1943_v60, 8 }
 0x2fa   : > { %v2115_v8 = vpop.trf.xlu1 }
 0x2fb   : > { %2166 = vxpose.xlu1.b32.end [4/4] (short) (narrow) %v1948_v53, 8  ;;  %v2240_v12 = vsel %vm2227_vm0, %v2115_v8, -inf }
 0x309   : > { %2195 = vxpose.xlu0.b32.start [1/4] (short) (narrow) %v1953_v35, 8 }
 0x30b   : > { %v2147_v6 = vpop.trf.xlu0 }
 0x30c   : > { %v2243_v7 = vsel %vm2227_vm0, %v2147_v6, -inf }
 0x30d   : > { %2196 = vxpose.xlu0.b32.cont [2/4] (short) (narrow) %v1958_v45, 8 }
 0x311   : > { %2197 = vxpose.xlu0.b32.cont [3/4] (short) (narrow) %v1963_v3, 8 }
 0x315   : > { %2198 = vxpose.xlu0.b32.end [4/4] (short) (narrow) %v1968_v0, 8  ;;  %v4311_v0 = vld [vmem:[%s4688_s19 + $0x28] ss:$16 sps:$4 sm:$0xff]  }
 0x322   : > { %2238 = vmax.xlane.f32.xlu1 %v2237_v5  ;;  %v4312_v5 = vld [vmem:[%s4688_s19 + $0xc] ss:$16 sps:$4 sm:$0xff]  }
 0x326   : > { %2244 = vmax.xlane.f32.xlu1 %v2243_v7 }
 0x342   : > { %2241 = vmax.xlane.f32.xlu0 %v2240_v12  ;;  %v4315_v12 = vld [vmem:[%s4688_s19 + $0x60] ss:$16 sps:$4 sm:$0xff]  }
 0x345   : > { %v2230_v13 = vpop.xlane.xlu1 %2229 }
 0x346   : > { %v2252_v18 = vsub.f32 %v1987_v22, %v2230_v13 }
 0x348   : > { %v2260_v4 = vmul.f32 1.442695, %v2252_v18  ;;  %v4317_v18 = vld [vmem:[%s4688_s19 + $0x40] ss:$16 sps:$4 sm:$0xff]  }
 0x34a   : > { %4279 = vpow2.f32 %v2260_v4 }
 0x356   : > { %v2233_v40 = vpop.xlane.xlu0 %2232 }
 0x357   : > { %v2253_v19 = vsub.f32 %v2019_v14, %v2233_v40  ;;  %v4280_v20 = vpop.eup %4279 }
 0x358   : > { %v2276_v27 = vsel %vm2227_vm0, %v4280_v20, 0.0 }
 0x359   : > { %v2262_v62 = vmul.f32 1.442695, %v2253_v19  ;;  %v4318_v19 = vld [vmem:[%s4688_s19 + $0x6c] ss:$16 sps:$4 sm:$0xff]  }
 0x35b   : > { %4281 = vpow2.f32 %v2262_v62 }
 0x365   : > { %v2236_v49 = vpop.xlane.xlu0 %2235 }
 0x366   : > { %v2254_v21 = vsub.f32 %v2051_v42, %v2236_v49  ;;  %v4319_v49 = vld [vmem:[%s4688_s19 + $0x68] ss:$16 sps:$4 sm:$0xff]  }
 0x368   : > { %v2264_v25 = vmul.f32 1.442695, %v2254_v21  ;;  %v5089_v11 = vpop.eup %4281  ;;  %v4320_v21 = vld [vmem:[%s4688_s19 + $0x4c] ss:$16 sps:$4 sm:$0xff]  }
 0x369   : > { %v2279_v30 = vsel %vm2227_vm0, %v5089_v11, 0.0 }
 0x36a   : > { %4283 = vpow2.f32 %v2264_v25  ;;  %v4321_v25 = vld [vmem:[%s4688_s19 + $0x48] ss:$16 sps:$4 sm:$0xff]  }
 0x36b   : > { %v2179_v16 = vpop.trf.xlu1 }
 0x36c   : > { %v2246_v58 = vsel %vm2227_vm0, %v2179_v16, -inf }
 0x36d   : > { %2247 = vmax.xlane.f32.xlu1 %v2246_v58 }
 0x377   : > { %v5093_v61 = vpop.eup %4283 }
 0x378   : > { %v2282_v32 = vsel %vm2227_vm0, %v5093_v61, 0.0 }
 0x385   : > { %v2211_v59 = vpop.trf.xlu0 }
 0x386   : > { %v2249_v2 = vsel %vm2227_vm0, %v2211_v59, -inf }
 0x387   : > { %2250 = vmax.xlane.f32.xlu1 %v2249_v2  ;;  %v4322_v2 = vld [vmem:[%s4688_s19 + $0xa4] ss:$16 sps:$4 sm:$0xff]  }
 0x38b   : > { %2277 = vadd.xlane.f32.xlu1 %v2276_v27 }
 0x38f   : > { %2280 = vadd.xlane.f32.xlu1 %v2279_v30  ;;  %v4324_v30 = vld [vmem:[%s4688_s19 + $0x84] ss:$16 sps:$4 sm:$0xff]  }
 0x393   : > { %2283 = vadd.xlane.f32.xlu1 %v2282_v32  ;;  %v4325_v32 = vld [vmem:[%s4688_s19 + $0x80] ss:$16 sps:$4 sm:$0xff]  }
 0x3ab   : > { %v2239_v9 = vpop.xlane.xlu1 %2238 }
 0x3ac   : > { %v2255_v50 = vsub.f32 %v2083_v41, %v2239_v9 }
 0x3ae   : > { %v2266_v33 = vmul.f32 1.442695, %v2255_v50  ;;  %v4326_v50 = vld [vmem:[%s4688_s19 + $0xac] ss:$16 sps:$4 sm:$0xff]  }
 0x3af   : > { %v2245_v37 = vpop.xlane.xlu1 %2244 }
 0x3b0   : > { %4285 = vpow2.f32 %v2266_v33  ;;  %v2257_v47 = vsub.f32 %v2147_v6, %v2245_v37  ;;  %v4313_v6 = vld [vmem:[%s4688_s19 + $0x8] ss:$16 sps:$4 sm:$0xff]   ;;  %v4330_v37 = vld [vmem:[%s4688_s19 + $0xe4] ss:$16 sps:$4 sm:$0xff]  }
 0x3b1   : > { %v4327_v33 = vld [vmem:[%s4688_s19 + $0xa8] ss:$16 sps:$4 sm:$0xff]  }
 0x3b2   : > { %v2270_v26 = vmul.f32 1.442695, %v2257_v47  ;;  %v4526_v47 = vmov 1983009808  }
 0x3bd   : > { %v5099_v1 = vpop.eup %4285 }
 0x3be   : > { %v2285_v36 = vsel %vm2227_vm0, %v5099_v1, 0.0 }
 0x3bf   : > { %2286 = vadd.xlane.f32.xlu1 %v2285_v36  ;;  %v4329_v36 = vld [vmem:[%s4688_s19 + $0x88] ss:$16 sps:$4 sm:$0xff]  }
 0x3cb   : > { %v2242_v39 = vpop.xlane.xlu0 %2241 }
 0x3cc   : > { %v2256_v10 = vsub.f32 %v2115_v8, %v2242_v39  ;;  %v4314_v8 = vld [vmem:[%s4688_s19 + $0x64] ss:$16 sps:$4 sm:$0xff]   ;;  %v2351_v39 = vunpack.c.l.s4 %v4526_v47 }
 0x3ce   : > { %v2268_v24 = vmul.f32 1.442695, %v2256_v10 }
 0x3d0   : > { %4287 = vpow2.f32 %v2268_v24  ;;  %v4331_v24 = vld [vmem:[%s4688_s19 + $0xe0] ss:$16 sps:$4 sm:$0xff]  }
 0x3d1   : > { %4289 = vpow2.f32 %v2270_v26 }
 0x3dd   : > { %v5103_v44 = vpop.eup %4287 }
 0x3de   : > { %v2288_v48 = vsel %vm2227_vm0, %v5103_v44, 0.0  ;;  %v5107_v23 = vpop.eup %4289 }
 0x3df   : > { %2289 = vadd.xlane.f32.xlu1 %v2288_v48  ;;  %v2291_v34 = vsel %vm2227_vm0, %v5107_v23, 0.0  ;;  %v4332_v48 = vld [vmem:[%s4688_s19 + $0xc4] ss:$16 sps:$4 sm:$0xff]  }
 0x3e3   : > { %2292 = vadd.xlane.f32.xlu1 %v2291_v34  ;;  %v2352_v34 = vunpack.c.0.s8 %v2351_v39 }
 0x3f6   : > { %v2248_v22 = vpop.xlane.xlu1 %2247 }
 0x3f7   : > { %v2258_v51 = vsub.f32 %v2179_v16, %v2248_v22  ;;  %v4316_v16 = vld [vmem:[%s4688_s19 + $0x44] ss:$16 sps:$4 sm:$0xff]  }
 0x3f9   : > { %v2272_v14 = vmul.f32 1.442695, %v2258_v51 }
 0x3fb   : > { %4291 = vpow2.f32 %v2272_v14  ;;  %v4333_v14 = vld [vmem:[%s4688_s19 + $0xc0] ss:$16 sps:$4 sm:$0xff]  }
 0x408   : > { %v5111_v15 = vpop.eup %4291 }
 0x409   : > { %v2294_v42 = vsel %vm2227_vm0, %v5111_v15, 0.0 }
 0x40a   : > { %2295 = vadd.xlane.f32.xlu1 %v2294_v42  ;;  %v4334_v42 = vld [vmem:[%s4688_s19 + $0xec] ss:$16 sps:$4 sm:$0xff]  }
 0x410   : > { %v2251_v52 = vpop.xlane.xlu1 %2250 }
 0x411   : > { %v2259_v54 = vsub.f32 %v2211_v59, %v2251_v52  ;;  %v5166_v52 = vsub.s32 %v2352_v34, %v4826_v17  ;;  %v4361_v34 = vld [vmem:[%s4688_s19 + $0x1c4] ss:$16 sps:$4 sm:$0xff]  }
 0x413   : > { %v2274_v46 = vmul.f32 1.442695, %v2259_v54 }
 0x414   : > { %v2278_v43 = vpop.xlane.xlu1 %2277 }
 0x415   : > { %4293 = vpow2.f32 %v2274_v46 }
 0x416   : > { %4295 = vrcp.f32 %v2278_v43 }
 0x418   : > { %v2281_v56 = vpop.xlane.xlu1 %2280 }
 0x419   : > { %4297 = vrcp.f32 %v2281_v56 }
 0x41c   : > { %v2284_v29 = vpop.xlane.xlu1 %2283 }
 0x41d   : > { %4299 = vrcp.f32 %v2284_v29 }
 0x422   : > { %v5115_v38 = vpop.eup %4293 }
 0x423   : > { %v4296_v31 = vpop.eup %4295  ;;  %v2297_v60 = vsel %vm2227_vm0, %v5115_v38, 0.0 }
 0x424   : > { %v2308_v53 = vmul.f32 %v4296_v31, %v2278_v43  ;;  %2298 = vadd.xlane.f32.xlu1 %v2297_v60 }
 0x426   : > { %v2316_v55 = vsub.f32 2.0, %v2308_v53  ;;  %v4298_v35 = vpop.eup %4297  ;;  %v4335_v53 = vld [vmem:[%s4688_s19 + $0xe8] ss:$16 sps:$4 sm:$0xff]  }
 0x427   : > { %v2309_v3 = vmul.f32 %v4298_v35, %v2281_v56 }
 0x428   : > { %v2324_v63 = vmul.f32 %v4296_v31, %v2316_v55  ;;  %v4336_v55 = vld [vmem:[%s4688_s19 + $0xcc] ss:$16 sps:$4 sm:$0xff]  }
 0x429   : > { %v2317_v41 = vsub.f32 2.0, %v2309_v3  ;;  %v4341_v3 = vld [vmem:[%s4688_s19 + $0x108] ss:$16 sps:$4 sm:$0xff]  }
 0x42a   : > { %v5119_v45 = vmul.f32 %v4280_v20, %v2324_v63  ;;  %v4300_v58 = vpop.eup %4299  ;;  %v4323_v20 = vld [vmem:[%s4688_s19 + $0xa0] ss:$16 sps:$4 sm:$0xff]   ;;  %v4338_v63 = vld [vmem:[%s4688_s19 + $0x12c] ss:$16 sps:$4 sm:$0xff]  }
 0x42b   : > { %v2325_v7 = vmul.f32 %v4298_v35, %v2317_v41  ;;  %v2310_v4 = vmul.f32 %v4300_v58, %v2284_v29  ;;  %v4339_v29 = vld [vmem:[%s4688_s19 + $0x128] ss:$16 sps:$4 sm:$0xff]  }
 0x42c   : > { %v2387_v57 = vpack.c.bf16 %v5119_v45, %v5119_v45 }
 0x42d   : > { %v5133_v13 = vmul.f32 %v5089_v11, %v2325_v7  ;;  %v2318_v62 = vsub.f32 2.0, %v2310_v4  ;;  %v4344_v4 = vld [vmem:[%s4688_s19 + $0x168] ss:$16 sps:$4 sm:$0xff]  }
 0x42e   : > { %3656 = vmatmul.mubr.msk.bf16.vlgmr.msra.gmra.mxu1 %vm2384_vm1, %v2387_v57 }
 0x42f   : > { %2452 = vmatpush1.bf16.msra.mxu1 %v4311_v0  ;;  %2471 = vmatprep.mubr.bf16.mxu1 %v4525_v28  ;;  %v2388_v40 = vpack.c.bf16 %v5133_v13, %v5133_v13  ;;  %v2326_v59 = vmul.f32 %v4300_v58, %v2318_v62  ;;  %v2348_v54 = vcombine.low %v5119_v45, %v5133_v13  ;;  %v4340_v45 = vld [vmem:[%s4688_s19 + $0x10c] ss:$16 sps:$4 sm:$0xff]   ;;  %v4347_v62 = vld [vmem:[%s4688_s19 + $0x140] ss:$16 sps:$4 sm:$0xff]  }
 0x430   : > { %2453 = vmatprep.subr.bf16.mxu1 %v4312_v5  ;;  %v4342_v0 = vld [vmem:[%s4688_s19 + $0x16c] ss:$16 sps:$4 sm:$0xff]  }
 0x431   : > { %v2334_v27 = vmul.f32 %v5093_v61, %v2326_v59  ;;  %v4328_v61 = vld [vmem:[%s4688_s19 + $0x8c] ss:$16 sps:$4 sm:$0xff]   ;;  %v2356_v31 = vrot.slane %v2348_v54, %v5166_v52 }
 0x432   : > { %v4350_v59 = vld [vmem:[%s4688_s19 + $0x1ac] ss:$16 sps:$4 sm:$0xff]  }
 0x433   : > { %2454 = vmatpush1.bf16.msra.mxu1 %v4313_v6  ;;  %v2389_v9 = vpack.c.bf16 %v2334_v27, %v2334_v27 }
 0x434   : > { %2495 = vmatprep.subr.bf16.mxu1 %v4314_v8 }
 0x436   : > { %3657 = vmatmul.mubr.msk.bf16.vlgmr.msra.gmra.mxu1 %vm2384_vm1, %v2387_v57 }
 0x437   : > { %2496 = vmatpush1.bf16.msra.mxu1 %v4315_v12  ;;  %2515 = vmatprep.mubr.bf16.mxu1 %v4525_v28 }
 0x438   : > { %2497 = vmatprep.subr.bf16.mxu1 %v4316_v16 }
 0x43b   : > { %2498 = vmatpush1.bf16.msra.mxu1 %v4317_v18 }
 0x43c   : > { %2536 = vmatprep.subr.bf16.mxu1 %v4318_v19  ;;  %v4345_v19 = vld [vmem:[%s4688_s19 + $0x144] ss:$16 sps:$4 sm:$0xff]  }
 0x43e   : > { %3658 = vmatmul.mubr.msk.bf16.vlgmr.msra.gmra.mxu1 %vm2384_vm1, %v2388_v40 }
 0x43f   : > { %2537 = vmatpush1.bf16.msra.mxu1 %v4319_v49  ;;  %2556 = vmatprep.mubr.bf16.mxu1 %v4525_v28  ;;  %v4346_v49 = vld [vmem:[%s4688_s19 + $0x14c] ss:$16 sps:$4 sm:$0xff]  }
 0x440   : > { %2538 = vmatprep.subr.bf16.mxu1 %v4320_v21  ;;  %v4348_v21 = vld [vmem:[%s4688_s19 + $0x148] ss:$16 sps:$4 sm:$0xff]  }
 0x443   : > { %2539 = vmatpush1.bf16.msra.mxu1 %v4321_v25  ;;  %v4349_v25 = vld [vmem:[%s4688_s19 + $0x1a4] ss:$16 sps:$4 sm:$0xff]  }
 0x444   : > { %2580 = vmatprep.subr.bf16.mxu1 %v4322_v2  ;;  %v4351_v2 = vld [vmem:[%s4688_s19 + $0x1a0] ss:$16 sps:$4 sm:$0xff]  }
 0x446   : > { %3659 = vmatmul.mubr.msk.bf16.vlgmr.msra.gmra.mxu1 %vm2384_vm1, %v2388_v40  ;;  %v4343_v40 = vld [vmem:[%s4688_s19 + $0x160] ss:$16 sps:$4 sm:$0xff]  }
 0x447   : > { %2581 = vmatpush1.bf16.msra.mxu1 %v4323_v20  ;;  %2600 = vmatprep.mubr.bf16.mxu1 %v4525_v28  ;;  %v4352_v20 = vld [vmem:[%s4688_s19 + $0x1a8] ss:$16 sps:$4 sm:$0xff]  }
 0x448   : > { %v2287_v11 = vpop.xlane.xlu1 %2286  ;;  %2582 = vmatprep.subr.bf16.mxu1 %v4324_v30  ;;  %v4355_v30 = vld [vmem:[%s4688_s19 + $0x180] ss:$16 sps:$4 sm:$0xff]  }
 0x449   : > { %4301 = vrcp.f32 %v2287_v11 }
 0x44b   : > { %2583 = vmatpush1.bf16.msra.mxu1 %v4325_v32  ;;  %v4356_v32 = vld [vmem:[%s4688_s19 + $0x188] ss:$16 sps:$4 sm:$0xff]  }
 0x44c   : > { %2621 = vmatprep.subr.bf16.mxu1 %v4326_v50  ;;  %v4358_v50 = vld [vmem:[%s4688_s19 + $0x1ec] ss:$16 sps:$4 sm:$0xff]  }
 0x44e   : > { %3660 = vmatmul.mubr.msk.bf16.vlgmr.msra.gmra.mxu1 %vm2384_vm1, %v2389_v9 }
 0x44f   : > { %2622 = vmatpush1.bf16.msra.mxu1 %v4327_v33  ;;  %2641 = vmatprep.mubr.bf16.mxu1 %v4525_v28 }
 0x450   : > { %2623 = vmatprep.subr.bf16.mxu1 %v4328_v61 }
 0x453   : > { %2624 = vmatpush1.bf16.msra.mxu1 %v4329_v36 }
 0x454   : > { %2665 = vmatprep.subr.bf16.mxu1 %v4330_v37 }
 0x456   : > { %v4302_v10 = vpop.eup %4301  ;;  %3661 = vmatmul.mubr.msk.bf16.vlgmr.msra.gmra.mxu1 %vm2384_vm1, %v2389_v9  ;;  %v4357_v9 = vld [vmem:[%s4688_s19 + $0x1e4] ss:$16 sps:$4 sm:$0xff]  }
 0x457   : > { %v2311_v26 = vmul.f32 %v4302_v10, %v2287_v11  ;;  %2666 = vmatpush1.bf16.msra.mxu1 %v4331_v24  ;;  %2685 = vmatprep.mubr.bf16.mxu1 %v4525_v28  ;;  %v4354_v11 = vld [vmem:[%s4688_s19 + $0x18c] ss:$16 sps:$4 sm:$0xff]   ;;  %v4359_v24 = vld [vmem:[%s4688_s19 + $0x1e0] ss:$16 sps:$4 sm:$0xff]  }
 0x458   : > { %2667 = vmatprep.subr.bf16.mxu1 %v4332_v48  ;;  %v4360_v48 = vld [vmem:[%s4688_s19 + $0x1e8] ss:$16 sps:$4 sm:$0xff]  }
 0x459   : > { %v2319_v22 = vsub.f32 2.0, %v2311_v26 }
 0x45b   : > { %v2327_v51 = vmul.f32 %v4302_v10, %v2319_v22  ;;  %2668 = vmatpush1.bf16.msra.mxu1 %v4333_v14  ;;  %v4362_v22 = vld [vmem:[%s4688_s19 + $0x1cc] ss:$16 sps:$4 sm:$0xff]  }
 0x45c   : > { %2706 = vmatprep.subr.bf16.mxu1 %v4334_v42 }
 0x45d   : > { %v2335_v46 = vmul.f32 %v5099_v1, %v2327_v51  ;;  %v4337_v1 = vld [vmem:[%s4688_s19 + $0xc8] ss:$16 sps:$4 sm:$0xff]  }
 0x45e   : > { %v4364_v51 = vld [vmem:[%s4688_s19 + $0x1c8] ss:$16 sps:$4 sm:$0xff]  }
 0x45f   : > { %v2349_v43 = vcombine.low %v2334_v27, %v2335_v46  ;;  %v2390_v56 = vpack.c.bf16 %v2335_v46, %v2335_v46  ;;  %v4353_v27 = vld [vmem:[%s4688_s19 + $0x184] ss:$16 sps:$4 sm:$0xff]  }
 0x461   : > { %v2363_v60 = vrot.slane %v2349_v43, %v5166_v52  ;;  %3662 = vmatmul.mubr.msk.bf16.vlgmr.msra.gmra.mxu1 %vm2384_vm1, %v2390_v56 }
 0x462   : > { %2707 = vmatpush1.bf16.msra.mxu1 %v4335_v53  ;;  %2726 = vmatprep.mubr.bf16.mxu1 %v4525_v28 }
 0x463   : > { %v2364_v17 = vcombine.low %v2356_v31, %v2363_v60  ;;  %2708 = vmatprep.subr.bf16.mxu1 %v4336_v55 }
 0x465   : > { %2385 = vst.msk [vmem:[%s5178_s26] sm:$0xff] %vm2384_vm1, %v2364_v17 }
 0x466   : > { %2709 = vmatpush1.bf16.msra.mxu1 %v4337_v1 }
 0x467   : > { %2791 = vmatprep.subr.bf16.mxu1 %v4338_v63 }
 0x468   : > { %v2290_v35 = vpop.xlane.xlu1 %2289 }
 0x469   : > { %4303 = vrcp.f32 %v2290_v35  ;;  %3663 = vmatmul.mubr.msk.bf16.vlgmr.msra.gmra.mxu1 %vm2384_vm1, %v2390_v56 }
 0x46a   : > { %2792 = vmatpush1.bf16.msra.mxu1 %v4339_v29  ;;  %2811 = vmatprep.mubr.bf16.mxu1 %v4525_v28 }
 0x46b   : > { %2793 = vmatprep.subr.bf16.mxu1 %v4340_v45 }
 0x46c   : > { %v2293_v57 = vpop.xlane.xlu1 %2292 }
 0x46d   : > { %4305 = vrcp.f32 %v2293_v57 }
 0x46e   : > { %2794 = vmatpush1.bf16.msra.mxu1 %v4341_v3 }
 0x46f   : > { %2876 = vmatprep.subr.bf16.mxu1 %v4342_v0 }
 0x476   : > { %v4304_v41 = vpop.eup %4303 }
 0x477   : > { %v2312_v5 = vmul.f32 %v4304_v41, %v2290_v35 }
 0x479   : > { %v2320_v6 = vsub.f32 2.0, %v2312_v5 }
 0x47a   : > { %v4306_v7 = vpop.eup %4305 }
 0x47b   : > { %v2328_v8 = vmul.f32 %v4304_v41, %v2320_v6  ;;  %v2313_v12 = vmul.f32 %v4306_v7, %v2293_v57 }
 0x47d   : > { %v5191_v13 = vmul.f32 %v5103_v44, %v2328_v8  ;;  %v2321_v16 = vsub.f32 2.0, %v2313_v12 }
 0x47f   : > { %v2391_v58 = vpack.c.bf16 %v5191_v13, %v5191_v13  ;;  %v2329_v18 = vmul.f32 %v4306_v7, %v2321_v16 }
 0x481   : > { %3664 = vmatmul.mubr.msk.bf16.vlgmr.msra.gmra.mxu0 %vm2384_vm1, %v2391_v58  ;;  %3665 = vmatmul.mubr.msk.bf16.vlgmr.msra.gmra.mxu1 %vm2384_vm1, %v2391_v58  ;;  %v5200_v44 = vmul.f32 %v5107_v23, %v2329_v18 }
 0x482   : > { %2836 = vmatpush1.bf16.msra.mxu0 %v4343_v40  ;;  %2877 = vmatpush1.bf16.msra.mxu1 %v4344_v4 }
 0x483   : > { %2837 = vmatprep.subr.bf16.mxu0 %v4345_v19  ;;  %2878 = vmatprep.subr.bf16.mxu1 %v4346_v49  ;;  %v2392_v23 = vpack.c.bf16 %v5200_v44, %v5200_v44  ;;  %v2365_v43 = vcombine.low %v5191_v13, %v5200_v44 }
 0x484   : > { %2855 = vmatprep.mubr.bf16.mxu0 %v4525_v28  ;;  %2896 = vmatprep.mubr.bf16.mxu1 %v4525_v28 }
 0x485   : > { %v2373_v53 = vrot.slane %v2365_v43, %v5166_v52 }
 0x486   : > { %2838 = vmatpush1.bf16.msra.mxu0 %v4347_v62  ;;  %2879 = vmatpush1.bf16.msra.mxu1 %v4348_v21 }
 0x487   : > { %2920 = vmatprep.subr.bf16.mxu0 %v4349_v25  ;;  %2961 = vmatprep.subr.bf16.mxu1 %v4350_v59 }
 0x489   : > { %3666 = vmatmul.mubr.msk.bf16.vlgmr.msra.gmra.mxu0 %vm2384_vm1, %v2392_v23  ;;  %3667 = vmatmul.mubr.msk.bf16.vlgmr.msra.gmra.mxu1 %vm2384_vm1, %v2392_v23 }
 0x48a   : > { %2921 = vmatpush1.bf16.msra.mxu0 %v4351_v2  ;;  %2962 = vmatpush1.bf16.msra.mxu1 %v4352_v20 }
 0x48b   : > { %2922 = vmatprep.subr.bf16.mxu0 %v4353_v27  ;;  %2963 = vmatprep.subr.bf16.mxu1 %v4354_v11 }
 0x48c   : > { %2940 = vmatprep.mubr.bf16.mxu0 %v4525_v28  ;;  %2981 = vmatprep.mubr.bf16.mxu1 %v4525_v28 }
 0x48e   : > { %2923 = vmatpush1.bf16.msra.mxu0 %v4355_v30  ;;  %2964 = vmatpush1.bf16.msra.mxu1 %v4356_v32 }
 0x48f   : > { %3005 = vmatprep.subr.bf16.mxu0 %v4357_v9  ;;  %3046 = vmatprep.subr.bf16.mxu1 %v4358_v50 }
 0x493   : > { %v2296_v33 = vpop.xlane.xlu1 %2295 }
 0x494   : > { %4307 = vrcp.f32 %v2296_v33 }
 0x4a1   : > { %v4308_v61 = vpop.eup %4307 }
 0x4a2   : > { %v2314_v36 = vmul.f32 %v4308_v61, %v2296_v33 }
 0x4a4   : > { %v2322_v37 = vsub.f32 2.0, %v2314_v36 }
 0x4a6   : > { %v2330_v47 = vmul.f32 %v4308_v61, %v2322_v37 }
 0x4a8   : > { %v2338_v39 = vmul.f32 %v5111_v15, %v2330_v47  ;;  %v4363_v15 = vld [vmem:[%s4688_s19 + $0x1c0] ss:$16 sps:$4 sm:$0xff]   ;;  %s3693_s19 = sshll.u32 %s4589_s25, 8 }
 0x4a9   : > { %s5257_s12 = scalar_lea.hbm %s5379_s6, %s3693_s19 }
 0x4aa   : > { %v2393_v10 = vpack.c.bf16 %v2338_v39, %v2338_v39 }
 0x4ac   : > { %3668 = vmatmul.mubr.msk.bf16.vlgmr.msra.gmra.mxu0 %vm2384_vm1, %v2393_v10  ;;  %3669 = vmatmul.mubr.msk.bf16.vlgmr.msra.gmra.mxu1 %vm2384_vm1, %v2393_v10 }
 0x4ad   : > { %v2299_v26 = vpop.xlane.xlu1 %2298  ;;  %3006 = vmatpush1.bf16.msra.mxu0 %v4359_v24  ;;  %3047 = vmatpush1.bf16.msra.mxu1 %v4360_v48 }
 0x4ae   : > { %4309 = vrcp.f32 %v2299_v26  ;;  %3007 = vmatprep.subr.bf16.mxu0 %v4361_v34  ;;  %3048 = vmatprep.subr.bf16.mxu1 %v4362_v22 }
 0x4af   : > { %3025 = vmatprep.mubr.bf16.mxu0 %v4525_v28  ;;  %3066 = vmatprep.mubr.bf16.mxu1 %v4525_v28 }
 0x4b1   : > { %3008 = vmatpush1.bf16.msra.mxu0 %v4363_v15  ;;  %3049 = vmatpush1.bf16.msra.mxu1 %v4364_v51 }
 0x4bb   : > { %v4310_v14 = vpop.eup %4309 }
 0x4bc   : > { %v2315_v42 = vmul.f32 %v4310_v14, %v2299_v26 }
 0x4be   : > { %v2323_v54 = vsub.f32 2.0, %v2315_v42 }
 0x4c0   : > { %v2331_v46 = vmul.f32 %v4310_v14, %v2323_v54 }
 0x4c2   : > { %v2339_v56 = vmul.f32 %v5115_v38, %v2331_v46 }
 0x4c4   : > { %v2366_v31 = vcombine.low %v2338_v39, %v2339_v56  ;;  %v2394_v60 = vpack.c.bf16 %v2339_v56, %v2339_v56 }
 0x4c6   : > { %v2380_v28 = vrot.slane %v2366_v31, %v5166_v52  ;;  %3670 = vmatmul.mubr.msk.bf16.vlgmr.msra.gmra.mxu0 %vm2384_vm1, %v2394_v60  ;;  %3671 = vmatmul.mubr.msk.bf16.vlgmr.msra.gmra.mxu1 %vm2384_vm1, %v2394_v60 }
 0x4c8   : > { %v2381_v17 = vcombine.low %v2373_v53, %v2380_v28 }
 0x4ca   : > { %2386 = vst.msk [vmem:[%s5178_s26 + $0x8] sm:$0xff] %vm2384_vm1, %v2381_v17 }
 0x4ee   : > { %v2432_v55 = vpop.f32.mrf.mxu1 }
 0x4f0   : > { %v2434_v1 = vpop.f32.mrf.mxu1 }
 0x4f2   : > { %v2436_v63 = vpop.f32.mrf.mxu1 }
 0x4f4   : > { %v2437_v35 = vpop.f32.mrf.mxu1 }
 0x4f6   : > { %v5244_v29 = vpop.f32.mrf.mxu1 }
 0x4f8   : > { %v5246_v38 = vpop.f32.mrf.mxu1 }
 0x4fa   : > { %v2477_v45 = vpop.f32.mrf.mxu1 }
 0x4fc   : > { %v2478_v57 = vpop.f32.mrf.mxu1 }
 0x4fe   : > { %v2517_v3 = vpop.f32.mrf.mxu1 }
 0x500   : > { %v2519_v0 = vpop.f32.mrf.mxu1 }
 0x502   : > { %v2521_v41 = vpop.f32.mrf.mxu1 }
 0x504   : > { %v2522_v5 = vpop.f32.mrf.mxu1 }
 0x506   : > { %v5248_v6 = vpop.f32.mrf.mxu1 }
 0x508   : > { %v2560_v7 = vpop.f32.mrf.mxu1 }
 0x50a   : > { %v2562_v8 = vpop.f32.mrf.mxu1 }
 0x50c   : > { %v2563_v12 = vpop.f32.mrf.mxu1 }
 0x50e   : > { %v2602_v13 = vpop.f32.mrf.mxu1 }
 0x510   : > { %v2604_v16 = vpop.f32.mrf.mxu1 }
 0x512   : > { %v2606_v58 = vpop.f32.mrf.mxu1 }
 0x514   : > { %v2607_v18 = vpop.f32.mrf.mxu1 }
 0x516   : > { %v5250_v40 = vpop.f32.mrf.mxu1 }
 0x518   : > { %v2645_v4 = vpop.f32.mrf.mxu1 }
 0x51a   : > { %v2647_v44 = vpop.f32.mrf.mxu1 }
 0x51b   : > { %4432 = shalt.err (!%p4429_p0)
}
 0x51c   : > { %s4433_s15 = scalar_lea.hbm %s5257_s12, 256  ;;  %s4437_s26 = scalar_lea.hbm %s5379_s6, 512 }
 0x51d   : > { %p4434_p5 = scmp.ne.s32.totalorder %s5257_s12, %s4433_s15  ;;  %p4438_p4 = scmp.lt.s32.totalorder %s5257_s12, %s5379_s6 }
 0x51e   : > { %p4439_p6 = scmp.lt.s32.totalorder %s4437_s26, %s4433_s15 }
 0x51f   : > { %p4435_p9 = pnand %p4434_p5, %p5395_p11 }
 0x520   : > { %p4440_p8 = por %p4439_p6, %p4438_p4 }
 0x521   : > { %p4436_p1 = pneg %p4435_p9 }
 0x523   : > { %p4441_p3 = pnand %p4440_p8, %p4436_p1 }
 0x525   : > { %4444 = shalt.err (!%p4441_p3)
}
 0x526   : > { %s4528_s29 = smov 128   ;;  %s4529_s11 = smov 8   ;;  %v2648_v19 = vpop.f32.mrf.mxu1  ;;  %v3124_v49 = vcombine.low %v2517_v3, %v2519_v0  ;;  %v3107_v62 = vcombine.low %v2432_v55, %v2434_v1  ;;  %v3141_v25 = vcombine.low %v2602_v13, %v2604_v16  ;;  %v3125_v30 = vcombine.low %v5248_v6, %v2560_v7 }
 0x527   : > { %3829 = dma.vmem_to_hbm [thread:$0]  (%p5395_p11), %s5259_s30, 256, %s5257_s12, %s3337_s10, %s4528_s29, %s4528_s29, %s4529_s11   ;;  %v3108_v33 = vcombine.low %v5244_v29, %v5246_v38  ;;  %v3142_v39 = vcombine.low %v5250_v40, %v2645_v4 }
 0x528   : > { %v2687_v21 = vpop.f32.mrf.mxu1  ;;  %v3132_v23 = vrot.slane %v3124_v49, %v5166_v52  ;;  %v3115_v2 = vrot.slane %v3107_v62, %v5166_v52  ;;  %v3149_v32 = vrot.slane %v3141_v25, %v5166_v52  ;;  %s3493_s30 = sshll.u32 %s4684_s20, 6  ;;  %v3139_v47 = vrot.slane %v3125_v30, %v5166_v52  ;;  %s3692_s10 = sshll.u32 %s4589_s25, 10 }
 0x529   : > { %v3122_v24 = vrot.slane %v3108_v33, %v5166_v52  ;;  %v3156_v14 = vrot.slane %v3142_v39, %v5166_v52  ;;  %s5298_s12 = scalar_lea.vmem [#allocation7], %s3493_s30  ;;  %s5324_s15 = scalar_lea.hbm %s5378_s5, %s3692_s10 }
 0x52a   : > { %v2689_v59 = vpop.f32.mrf.mxu1  ;;  %v3672_v11 = vcombine.low %v3115_v2, %v3132_v23  ;;  %s3351_s13 = sshll.u32 %s5298_s12, 4  ;;  %s3332_s25 = scalar_lea.sflag [#allocation4], %s4684_s20  ;;  %s5326_s13 = int_to_ptr.vmem [resolvable:$true] %s3351_s13 }
 0x52b   : > { %v3158_v20 = vcombine.low %v2687_v21, %v2689_v59  ;;  %v3673_v51 = vcombine.low %v3122_v24, %v3139_v47  ;;  %s4445_s14 = scalar_lea.vmem %s5326_s13, 1024  ;;  %s4530_s16 = smov [#allocation7]  }
 0x52c   : > { %v2691_v27 = vpop.f32.mrf.mxu1  ;;  %v3253_v37 = vrot.slane %v3672_v11, %v5166_v52  ;;  %p4446_p7 = scmp.ne.s32.totalorder %s5326_s13, %s4445_s14  ;;  %s4449_s26 = sshll.u32 %s4530_s16, 4  ;;  %s4450_s26 = int_to_ptr.vmem [resolvable:$false] %s4449_s26 }
 0x52d   : > { %v3166_v9 = vrot.slane %v3158_v20, %v5166_v52  ;;  %v3260_v43 = vrot.slane %v3673_v51, %v5166_v52  ;;  %s4451_s19 = scalar_lea.vmem %s4450_s26, 2048  ;;  %p4452_p2 = scmp.lt.s32.totalorder %s5326_s13, %s4450_s26 }
 0x52e   : > { %v2692_v50 = vpop.f32.mrf.mxu1  ;;  %p4447_p12 = pnand %p4446_p7, %p5395_p11  ;;  %p4453_p13 = scmp.lt.s32.totalorder %s4451_s19, %s4445_s14 }
 0x52f   : > { %v3674_v61 = vcombine.low %v3149_v32, %v3166_v9 }
 0x530   : > { %v2728_v36 = vpop.f32.mrf.mxu1  ;;  %p4448_p10 = pneg %p4447_p12  ;;  %p4454_p0 = por %p4453_p13, %p4452_p2 }
 0x531   : > { %v3267_v10 = vrot.slane %v3674_v61, %v5166_v52 }
 0x532   : > { %v2730_v26 = vpop.f32.mrf.mxu1  ;;  %p4455_p5 = pnand %p4454_p0, %p4448_p10 }
 0x533   : > { %v3275_v48 = vcombine.low %v3253_v37, %v3267_v10  ;;  %v3276_v34 = vcombine.high %v3253_v37, %v3267_v10  ;;  %v3159_v22 = vcombine.low %v2728_v36, %v2730_v26 }
 0x534   : > { %v2732_v15 = vpop.f32.mrf.mxu1 }
 0x535   : > { %3323 = vst [vmem:[%s5298_s12] sm:$0xff] %v3275_v48  ;;  %3324 = vst [vmem:[%s5298_s12 + $0x8] sm:$0xff] %v3276_v34  ;;  %v3173_v42 = vrot.slane %v3159_v22, %v5166_v52 }
 0x536   : > { %v2733_v54 = vpop.f32.mrf.mxu1 }
 0x537   : > { %v3675_v46 = vcombine.low %v3156_v14, %v3173_v42 }
 0x539   : > { %v3274_v56 = vrot.slane %v3675_v46, %v5166_v52 }
 0x53b   : > { %v3277_v31 = vcombine.low %v3260_v43, %v3274_v56  ;;  %v3278_v60 = vcombine.high %v3260_v43, %v3274_v56 }
 0x53d   : > { %3325 = vst [vmem:[%s5298_s12 + $0x10] sm:$0xff] %v3277_v31  ;;  %3326 = vst [vmem:[%s5298_s12 + $0x18] sm:$0xff] %v3278_v60 }
 0x541   : > { %v2772_v53 = vpop.f32.mrf.mxu0  ;;  %v2813_v28 = vpop.f32.mrf.mxu1 }
 0x543   : > { %v2774_v17 = vpop.f32.mrf.mxu0  ;;  %v2815_v55 = vpop.f32.mrf.mxu1 }
 0x544   : > { %v3175_v1 = vcombine.low %v2772_v53, %v2774_v17  ;;  %v3176_v63 = vcombine.low %v2813_v28, %v2815_v55 }
 0x545   : > { %v2776_v35 = vpop.f32.mrf.mxu0  ;;  %v2817_v29 = vpop.f32.mrf.mxu1 }
 0x546   : > { %v3183_v20 = vrot.slane %v3175_v1, %v5166_v52  ;;  %v3190_v27 = vrot.slane %v3176_v63, %v5166_v52 }
 0x547   : > { %v2777_v38 = vpop.f32.mrf.mxu0  ;;  %v2818_v45 = vpop.f32.mrf.mxu1 }
 0x549   : > { %v2857_v57 = vpop.f32.mrf.mxu0  ;;  %v2898_v3 = vpop.f32.mrf.mxu1 }
 0x54b   : > { %v2859_v0 = vpop.f32.mrf.mxu0  ;;  %v2900_v41 = vpop.f32.mrf.mxu1 }
 0x54c   : > { %v3192_v19 = vcombine.low %v2857_v57, %v2859_v0  ;;  %v3193_v49 = vcombine.low %v2898_v3, %v2900_v41 }
 0x54d   : > { %v2861_v5 = vpop.f32.mrf.mxu0  ;;  %v2902_v6 = vpop.f32.mrf.mxu1 }
 0x54e   : > { %v3200_v62 = vrot.slane %v3192_v19, %v5166_v52  ;;  %v3207_v21 = vrot.slane %v3193_v49, %v5166_v52 }
 0x54f   : > { %v2862_v7 = vpop.f32.mrf.mxu0  ;;  %v2903_v8 = vpop.f32.mrf.mxu1 }
 0x550   : > { %v3676_v50 = vcombine.low %v3183_v20, %v3200_v62  ;;  %v3677_v33 = vcombine.low %v3190_v27, %v3207_v21 }
 0x552   : > { %v3289_v22 = vrot.slane %v3676_v50, %v5166_v52  ;;  %v3296_v15 = vrot.slane %v3677_v33, %v5166_v52 }
 0x56c   : > { %v2942_v12 = vpop.f32.mrf.mxu0  ;;  %v2983_v13 = vpop.f32.mrf.mxu1 }
 0x56e   : > { %v2944_v16 = vpop.f32.mrf.mxu0  ;;  %v2985_v58 = vpop.f32.mrf.mxu1 }
 0x56f   : > { %v3209_v59 = vcombine.low %v2942_v12, %v2944_v16  ;;  %v3210_v2 = vcombine.low %v2983_v13, %v2985_v58 }
 0x570   : > { %v2946_v18 = vpop.f32.mrf.mxu0  ;;  %v2987_v40 = vpop.f32.mrf.mxu1 }
 0x571   : > { %v3217_v37 = vrot.slane %v3209_v59, %v5166_v52  ;;  %v3224_v47 = vrot.slane %v3210_v2, %v5166_v52 }
 0x572   : > { %v2947_v4 = vpop.f32.mrf.mxu0  ;;  %v2988_v44 = vpop.f32.mrf.mxu1 }
 0x586   : > { %v3027_v23 = vpop.f32.mrf.mxu0  ;;  %v3068_v25 = vpop.f32.mrf.mxu1 }
 0x588   : > { %v3029_v11 = vpop.f32.mrf.mxu0  ;;  %v3070_v30 = vpop.f32.mrf.mxu1 }
 0x589   : > { %v3226_v32 = vcombine.low %v3027_v23, %v3029_v11  ;;  %v3227_v9 = vcombine.low %v3068_v25, %v3070_v30 }
 0x58a   : > { %v3031_v61 = vpop.f32.mrf.mxu0  ;;  %v3072_v36 = vpop.f32.mrf.mxu1 }
 0x58b   : > { %v3234_v39 = vrot.slane %v3226_v32, %v5166_v52  ;;  %v3241_v10 = vrot.slane %v3227_v9, %v5166_v52 }
 0x58c   : > { %v3032_v26 = vpop.f32.mrf.mxu0  ;;  %v3073_v24 = vpop.f32.mrf.mxu1 }
 0x58d   : > { %v3678_v48 = vcombine.low %v3217_v37, %v3234_v39  ;;  %v3679_v34 = vcombine.low %v3224_v47, %v3241_v10 }
 0x58f   : > { %v3303_v51 = vrot.slane %v3678_v48, %v5166_v52  ;;  %v3310_v14 = vrot.slane %v3679_v34, %v5166_v52 }
 0x591   : > { %v3311_v42 = vcombine.low %v3289_v22, %v3303_v51  ;;  %v3312_v54 = vcombine.high %v3289_v22, %v3303_v51  ;;  %v3313_v46 = vcombine.low %v3296_v15, %v3310_v14  ;;  %v3314_v43 = vcombine.high %v3296_v15, %v3310_v14 }
 0x593   : > { %3327 = vst [vmem:[%s5298_s12 + $0x20] sm:$0xff] %v3311_v42  ;;  %3328 = vst [vmem:[%s5298_s12 + $0x28] sm:$0xff] %v3312_v54 }
 0x594   : > { %3329 = vst [vmem:[%s5298_s12 + $0x30] sm:$0xff] %v3313_v46  ;;  %3330 = vst [vmem:[%s5298_s12 + $0x38] sm:$0xff] %v3314_v43 }
 0x595   : > { %4458 = shalt.err (!%p4455_p5)
}
 0x596   : > { %s4459_s27 = scalar_lea.hbm %s5324_s15, 1024  ;;  %s4463_s30 = scalar_lea.hbm %s5378_s5, 2048 }
 0x597   : > { %p4460_p9 = scmp.ne.s32.totalorder %s5324_s15, %s4459_s27  ;;  %p4464_p6 = scmp.lt.s32.totalorder %s5324_s15, %s5378_s5 }
 0x598   : > { %p4465_p8 = scmp.lt.s32.totalorder %s4463_s30, %s4459_s27 }
 0x599   : > { %p4461_p1 = pnand %p4460_p9, %p5395_p11 }
 0x59a   : > { %p4466_p3 = por %p4465_p8, %p4464_p6 }
 0x59b   : > { %p4462_p4 = pneg %p4461_p1 }
 0x59d   : > { %p4467_p7 = pnand %p4466_p3, %p4462_p4 }
 0x59f   : > { %4470 = shalt.err (!%p4467_p7)
}
 0x5a0   : > { %s4531_s8 = smov 512   ;;  %s4532_s7 = smov 32  }
 0x5a1   : > { %3828 = dma.vmem_to_hbm [thread:$0]  (%p5395_p11), %s5326_s13, 1024, %s5324_s15, %s3332_s25, %s4531_s8, %s4531_s8, %s4532_s7  }
 0x5a2 PF: > { %s3382_s14 = sand.u32 1, %s4505_s21   ;;  %p5396_p12 = scmp.ne.s32.totalorder %s5385_s28, 0 }
 0x5a3   : > { %p5397_p10 = scmp.ge.s32.totalorder %s4517_s24, 2  ;;  %s3383_s16 = scalar_lea.sflag [#allocation4], %s3382_s14 }
 0x5a5   : > { %p3841_p2 = pnand %p5397_p10, %p5396_p12 }
 0x5a7   : > { %p3842_p13 = pneg %p3841_p2 }
 0x5a9   : > { %4496 = dma.done.wait (%p3842_p13), %s3383_s16, 1024  }
 0x5aa   : > { %4498 = vsyncadd (%p3842_p13), %s3383_s16, 4294966272  ;;  %s3392_s26 = scalar_lea.sflag [#allocation9], %s3382_s14 }
 0x5ab   : > { %4500 = dma.done.wait (%p3842_p13), %s3392_s26, 256  }
 0x5ac   : > { %4502 = vsyncadd (%p3842_p13), %s3392_s26, 4294967040  ;;  %p24_p11 = scmp.ge.s32.totalorder %s4622_s9, 4   ;;  %s5398_s21 = smov %s4509_s22 }
 0x5ad   : > { %s5399_s22 = smov %s4513_s23  ;;  %s5400_s23 = smov %s4639_s17 }
 0x5ae   : > { %s5401_s24 = smov %s4622_s9  ;;  %26 = sbr.rel (!%p24_p11) target bundleno = 8 (0x8), region = 106 }
 0x5b3   :  { %3397 = vsyncpa [#allocation3], 1 }
 0x5b4   :  { %3399 = vsyncpa [#allocation3 + $0x1], 1 }
 0x5b5   :  { %3400 = vsyncpa [#allocation6], 1 }
 0x5b6   :  { %3401 = vsyncpa [#allocation4], 1 }
 0x5b7   :  { %3403 = vsyncpa [#allocation4 + $0x1], 1 }
 0x5b8   :  { %3404 = vsyncpa [#allocation9], 1 }
 0x5b9   :  { %3406 = vsyncpa [#allocation9 + $0x1], 1 }

</bundles_post_ra>
